<compile_context>
chip_gen: v7x
topology: tpu7x:2x2x1
jax: 0.10.0
libtpu: 0.0.40
codegen_flags: <defaults>
</compile_context>

<pallas_src>
import functools

import jax
import jax.numpy as jnp
from jax.experimental import pallas as pl
from jax.experimental.pallas import tpu as pltpu


# ----------------------------- tile selection -------------------------------

_M_TILES = (512, 256, 128, 64, 32, 16)      # sublane-dim candidates (mult of 16)
_N_TILES = (1024, 512, 256, 128)            # lane-dim candidates (mult of 128)
_K_TILES = (512, 256, 128)                  # contraction-dim candidates


def _pick(dim, candidates):
    """Largest candidate tile that exactly divides `dim`, else the full dim."""
    for c in candidates:
        if dim % c == 0:
            return c
    return dim


# ------------------------------ Pallas kernels ------------------------------


def _gelu(y):
    # TODO(synk): tanh-approx GELU in-kernel (EUP tanh); reference uses exact erf GELU.
    c = 0.7978845608028654  # sqrt(2/pi)
    return 0.5 * y * (1.0 + jnp.tanh(c * (y + 0.044715 * y * y * y)))


def _matmul_bias_kernel(x_ref, w_ref, bias_ref, o_ref, acc_ref, *, act):
    k = pl.program_id(2)

    @pl.when(k == 0)
    def _():
        acc_ref[...] = jnp.zeros_like(acc_ref)

    acc_ref[...] += jnp.dot(x_ref[...], w_ref[...],
                            preferred_element_type=jnp.float32)

    @pl.when(k == pl.num_programs(2) - 1)
    def _():
        y = acc_ref[...] + bias_ref[...].astype(jnp.float32)
        if act == "gelu":
            y = _gelu(y)
        o_ref[...] = y.astype(o_ref.dtype)


def _matmul_bias_res_kernel(x_ref, w_ref, bias_ref, res_ref, o_ref, acc_ref, *, act):
    k = pl.program_id(2)

    @pl.when(k == 0)
    def _():
        acc_ref[...] = jnp.zeros_like(acc_ref)

    acc_ref[...] += jnp.dot(x_ref[...], w_ref[...],
                            preferred_element_type=jnp.float32)

    @pl.when(k == pl.num_programs(2) - 1)
    def _():
        y = acc_ref[...] + bias_ref[...].astype(jnp.float32)
        if act == "gelu":
            y = _gelu(y)
        y = y + res_ref[...].astype(jnp.float32)
        o_ref[...] = y.astype(o_ref.dtype)


def matmul_bias(x, w, bias, resid=None, *, act=None, out_dtype=jnp.bfloat16):
    """y = [resid +] act(x @ w + bias). K-tiled GEMM with fp32 VMEM accumulator."""
    M, K = x.shape
    N = w.shape[1]
    tm = _pick(M, _M_TILES)
    tn = _pick(N, _N_TILES)
    tk = _pick(K, _K_TILES)
    grid = (M // tm, N // tn, K // tk)

    in_specs = [
        pl.BlockSpec((tm, tk), lambda i, j, k: (i, k)),
        pl.BlockSpec((tk, tn), lambda i, j, k: (k, j)),
        pl.BlockSpec((1, tn), lambda i, j, k: (0, j)),
    ]
    args = [x, w, bias.reshape(1, N)]
    if resid is not None:
        in_specs.append(pl.BlockSpec((tm, tn), lambda i, j, k: (i, j)))
        args.append(resid)
        kernel = functools.partial(_matmul_bias_res_kernel, act=act)
    else:
        kernel = functools.partial(_matmul_bias_kernel, act=act)

    return pl.pallas_call(
        kernel,
        out_shape=jax.ShapeDtypeStruct((M, N), out_dtype),
        grid=grid,
        in_specs=in_specs,
        out_specs=pl.BlockSpec((tm, tn), lambda i, j, k: (i, j)),
        scratch_shapes=[pltpu.VMEM((tm, tn), jnp.float32)],
        compiler_params=pltpu.CompilerParams(
            dimension_semantics=("parallel", "parallel", "arbitrary")),
    )(*args)


def _ln_matmul_kernel(x_ref, g_ref, b_ref, w_ref, bias_ref, o_ref, *, eps, act):
    # LayerNorm over the full feature dim (fp32 math), then GEMM + bias (+GELU).
    x = x_ref[...].astype(jnp.float32)
    mean = jnp.mean(x, axis=-1, keepdims=True)
    var = jnp.mean(jnp.square(x - mean), axis=-1, keepdims=True)
    xn = (x - mean) * jax.lax.rsqrt(var + eps)
    xn = (xn * g_ref[...] + b_ref[...]).astype(w_ref.dtype)
    y = jnp.dot(xn, w_ref[...], preferred_element_type=jnp.float32)
    y = y + bias_ref[...].astype(jnp.float32)
    if act == "gelu":
        y = _gelu(y)
    o_ref[...] = y.astype(o_ref.dtype)


def ln_matmul_bias(x, g, b, w, bias, *, act=None, eps=1e-6, out_dtype=jnp.bfloat16):
    """y = act(LayerNorm(x) @ w + bias), LN fused into the GEMM prologue."""
    M, K = x.shape
    N = w.shape[1]
    tm = _pick(M, _M_TILES)
    tn = _pick(N, _N_TILES)
    grid = (M // tm, N // tn)

    return pl.pallas_call(
        functools.partial(_ln_matmul_kernel, eps=eps, act=act),
        out_shape=jax.ShapeDtypeStruct((M, N), out_dtype),
        grid=grid,
        in_specs=[
            pl.BlockSpec((tm, K), lambda i, j: (i, 0)),
            pl.BlockSpec((1, K), lambda i, j: (0, 0)),
            pl.BlockSpec((1, K), lambda i, j: (0, 0)),
            pl.BlockSpec((K, tn), lambda i, j: (0, j)),
            pl.BlockSpec((1, tn), lambda i, j: (0, j)),
        ],
        out_specs=pl.BlockSpec((tm, tn), lambda i, j: (i, j)),
        compiler_params=pltpu.CompilerParams(
            dimension_semantics=("parallel", "parallel")),
    )(x, g.reshape(1, K), b.reshape(1, K), w, bias.reshape(1, N))


def _layernorm_kernel(x_ref, g_ref, b_ref, o_ref, *, eps):
    x = x_ref[...].astype(jnp.float32)
    mean = jnp.mean(x, axis=-1, keepdims=True)
    var = jnp.mean(jnp.square(x - mean), axis=-1, keepdims=True)
    y = (x - mean) * jax.lax.rsqrt(var + eps)
    o_ref[...] = (y * g_ref[...] + b_ref[...]).astype(o_ref.dtype)


def layernorm(x, g, b, *, eps=1e-6, out_dtype=jnp.float32):
    M, D = x.shape
    tm = _pick(M, _M_TILES)
    return pl.pallas_call(
        functools.partial(_layernorm_kernel, eps=eps),
        out_shape=jax.ShapeDtypeStruct((M, D), out_dtype),
        grid=(M // tm,),
        in_specs=[
            pl.BlockSpec((tm, D), lambda i: (i, 0)),
            pl.BlockSpec((1, D), lambda i: (0, 0)),
            pl.BlockSpec((1, D), lambda i: (0, 0)),
        ],
        out_specs=pl.BlockSpec((tm, D), lambda i: (i, 0)),
        compiler_params=pltpu.CompilerParams(dimension_semantics=("parallel",)),
    )(x, g.reshape(1, D), b.reshape(1, D))


def _attention_kernel(qkv_ref, o_ref, *, num_heads, head_dim, scale):
    # qkv_ref: (1, T, 3*D) with column layout [Q heads | K heads | V heads].
    D = num_heads * head_dim
    qkv = qkv_ref[0]
    outs = []
    for h in range(num_heads):
        q = qkv[:, h * head_dim:(h + 1) * head_dim]
        k = qkv[:, D + h * head_dim:D + (h + 1) * head_dim]
        v = qkv[:, 2 * D + h * head_dim:2 * D + (h + 1) * head_dim]
        # Contract last dims directly: no k.T materialization.
        s = jax.lax.dot_general(q, k, (((1,), (1,)), ((), ())),
                                preferred_element_type=jnp.float32) * scale
        s = s - jnp.max(s, axis=-1, keepdims=True)  # numerically-stable softmax
        p = jnp.exp(s)
        p = p * pl.reciprocal(jnp.sum(p, axis=-1, keepdims=True), approx=True)
        outs.append(jnp.dot(p.astype(v.dtype), v,
                            preferred_element_type=jnp.float32))
    # Single lane-dense store of the full (T, D) tile, already in (B, T, D) layout.
    o_ref[0] = jnp.concatenate(outs, axis=-1).astype(o_ref.dtype)


def attention(qkv, *, num_heads, head_dim, scale, out_dtype=jnp.bfloat16):
    """qkv: (B, T, 3*D) fused projection; returns (B, T, D) attention output."""
    B, T, threeD = qkv.shape
    D = num_heads * head_dim
    return pl.pallas_call(
        functools.partial(_attention_kernel, num_heads=num_heads,
                          head_dim=head_dim, scale=scale),
        out_shape=jax.ShapeDtypeStruct((B, T, D), out_dtype),
        grid=(B,),
        in_specs=[pl.BlockSpec((1, T, threeD), lambda b: (b, 0, 0))],
        out_specs=pl.BlockSpec((1, T, D), lambda b: (b, 0, 0)),
        compiler_params=pltpu.CompilerParams(dimension_semantics=("parallel",)),
    )(qkv)


# ------------------------------- parameters ---------------------------------


def init_params(key, *, in_chans, embed_dim, depth, num_heads, mlp_ratio,
                num_patches, patch_size):
    del num_heads  # head count only affects the forward reshapes
    hidden = int(embed_dim * mlp_ratio)
    keys = iter(jax.random.split(key, 8 + 12 * depth))

    def nrm(shape, std=0.02):
        return std * jax.random.normal(next(keys), shape, jnp.float32)

    params = {
        "patch_w": nrm((in_chans * patch_size * patch_size, embed_dim)),
        "patch_b": nrm((embed_dim,)),
        "cls_token": nrm((1, 1, embed_dim)),
        "pos_embed": nrm((1, num_patches + 1, embed_dim)),
        "norm_g": jnp.ones((embed_dim,), jnp.float32),
        "norm_b": jnp.zeros((embed_dim,), jnp.float32),
        "blocks": [],
    }
    for _ in range(depth):
        params["blocks"].append({
            "n1_g": jnp.ones((embed_dim,), jnp.float32),
            "n1_b": jnp.zeros((embed_dim,), jnp.float32),
            "qkv_w": nrm((embed_dim, 3 * embed_dim)),
            "qkv_b": nrm((3 * embed_dim,)),
            "proj_w": nrm((embed_dim, embed_dim)),
            "proj_b": nrm((embed_dim,)),
            "n2_g": jnp.ones((embed_dim,), jnp.float32),
            "n2_b": jnp.zeros((embed_dim,), jnp.float32),
            "fc1_w": nrm((embed_dim, hidden)),
            "fc1_b": nrm((hidden,)),
            "fc2_w": nrm((hidden, embed_dim)),
            "fc2_b": nrm((embed_dim,)),
        })
    return params


# --------------------------------- forward ----------------------------------


def dino_feature_forward(params, img, *, patch_size, num_heads, n=1):
    """Replicates DinoFeature.forward(img, n): returns (cls_token, patch_tokens)."""
    B, C, H, W = img.shape
    fh, fw = H // patch_size, W // patch_size
    N = fh * fw
    D = params["patch_w"].shape[1]
    head_dim = D // num_heads
    scale = head_dim ** -0.5
    cdt = jnp.bfloat16  # activation / MXU-operand dtype; accumulation stays fp32

    # Patch embedding: Conv2d(C, D, k=P, s=P) == unfold + K-tiled GEMM.
    patches = img.reshape(B, C, fh, patch_size, fw, patch_size)
    patches = patches.transpose(0, 2, 4, 1, 3, 5)            # (B, fh, fw, C, P, P)
    patches = patches.reshape(B * N, C * patch_size * patch_size).astype(cdt)
    tok = matmul_bias(patches, params["patch_w"].astype(cdt), params["patch_b"],
                      out_dtype=cdt).reshape(B, N, D)

    # prepare_tokens: prepend cls, add pos embedding (sizes match -> no interpolation).
    cls = jnp.broadcast_to(params["cls_token"], (B, 1, D))
    x = jnp.concatenate([cls, tok.astype(jnp.float32)], axis=1) + params["pos_embed"]
    x = x.astype(cdt)                                          # (B, T, D)
    T = N + 1

    outputs = []
    nb = len(params["blocks"])
    x2 = x.reshape(B * T, D)
    for i, blk in enumerate(params["blocks"]):
        # --- attention sub-block: x = x + proj(attn(norm1(x))) ---
        qkv = ln_matmul_bias(x2, blk["n1_g"], blk["n1_b"],
                             blk["qkv_w"].astype(cdt), blk["qkv_b"], out_dtype=cdt)
        a = attention(qkv.reshape(B, T, 3 * D), num_heads=num_heads,
                      head_dim=head_dim, scale=scale, out_dtype=cdt)
        x2 = matmul_bias(a.reshape(B * T, D), blk["proj_w"].astype(cdt),
                         blk["proj_b"], resid=x2, out_dtype=cdt)

        # --- MLP sub-block: x = x + fc2(gelu(fc1(norm2(x)))) ---
        h = ln_matmul_bias(x2, blk["n2_g"], blk["n2_b"],
                           blk["fc1_w"].astype(cdt), blk["fc1_b"],
                           act="gelu", out_dtype=cdt)
        x2 = matmul_bias(h, blk["fc2_w"].astype(cdt), blk["fc2_b"],
                         resid=x2, out_dtype=cdt)

        # get_intermediate_layers: final norm applied to the last n block outputs.
        if nb - i <= n:
            xn = layernorm(x2, params["norm_g"], params["norm_b"],
                           out_dtype=jnp.float32)
            outputs.append(xn.reshape(B, T, D))

    feat_tokens = [f[:, 1:, :].reshape(B, fh, fw, D).transpose(0, 3, 1, 2)
                   for f in outputs]
    feat_cls = [f[:, 0, :] for f in outputs]
    if len(feat_tokens) == 1:
        return feat_cls[0], feat_tokens[0]
    return feat_cls, feat_tokens


# ----------------------------------- main ------------------------------------


if __name__ == "__main__":
    # 'vits16' -> patch_size 16; synthetic ViT-S-style config at small width/depth.
    B, C, H, W = 2, 3, 64, 64
    patch_size = 16
    embed_dim, depth, num_heads, mlp_ratio = 32, 2, 2, 4.0
    fh, fw = H // patch_size, W // patch_size

    key = jax.random.PRNGKey(0)
    kp, kx = jax.random.split(key)
    params = init_params(
        kp, in_chans=C, embed_dim=embed_dim, depth=depth, num_heads=num_heads,
        mlp_ratio=mlp_ratio, num_patches=fh * fw, patch_size=patch_size)
    img = jax.random.normal(kx, (B, C, H, W), jnp.float32)

    fwd = jax.jit(functools.partial(
        dino_feature_forward, patch_size=patch_size, num_heads=num_heads, n=1))
    cls_tok, patch_tok = fwd(params, img)
    jax.block_until_ready((cls_tok, patch_tok))

    assert cls_tok.shape == (B, embed_dim), cls_tok.shape
    assert patch_tok.shape == (B, embed_dim, fh, fw), patch_tok.shape
    assert bool(jnp.all(jnp.isfinite(cls_tok))) and bool(jnp.all(jnp.isfinite(patch_tok)))
    print("KERNEL_OK")
</pallas_src>

<mosaic_0001>
module attributes {stable_mosaic.version = 11 : i64} {
  func.func @_matmul_bias_kernel(%arg0: i32, %arg1: i32, %arg2: i32, %arg3: memref<32x256xbf16, #tpu.memory_space<vmem>>, %arg4: memref<256x32xbf16, #tpu.memory_space<vmem>>, %arg5: memref<1x32xf32, #tpu.memory_space<vmem>>, %arg6: memref<32x32xbf16, #tpu.memory_space<vmem>>, %arg7: memref<32x32xf32, #tpu.memory_space<vmem>>) attributes {dimension_semantics = [#tpu.dimension_semantics<parallel>, #tpu.dimension_semantics<parallel>, #tpu.dimension_semantics<arbitrary>], iteration_bounds = array<i64: 1, 1, 3>, scalar_prefetch = 0 : i64, scratch_operands = 1 : i64, tpu.core_type = #tpu.core_type<tc>, window_params = [{transform_indices = @transform_0, window_bounds = array<i64: 32, 256>}, {transform_indices = @transform_1, window_bounds = array<i64: 256, 32>}, {transform_indices = @transform_2, window_bounds = array<i64: 1, 32>}, {transform_indices = @transform_3, window_bounds = array<i64: 32, 32>}]} {
    %c0_i32 = arith.constant 0 : i32
    %0 = arith.cmpi eq, %arg2, %c0_i32 : i32
    %1 = arith.extui %0 : i1 to i32
    %c0_i32_0 = arith.constant 0 : i32
    %2 = arith.cmpi ne, %1, %c0_i32_0 : i32
    scf.if %2 {
      %cst_9 = arith.constant 0.000000e+00 : f32
      %12 = vector.broadcast %cst_9 : f32 to vector<32x32xf32>
      %c0_10 = arith.constant 0 : index
      %c0_11 = arith.constant 0 : index
      %13 = vector.load %arg7[%c0_10, %c0_11] : memref<32x32xf32, #tpu.memory_space<vmem>>, vector<32x32xf32>
      tpu.vector_store %arg7[%c0_10, %c0_11], %12 {strides = array<i32>} : memref<32x32xf32, #tpu.memory_space<vmem>>, vector<32x32xf32>,
    } else {
    }
    %c0 = arith.constant 0 : index
    %c0_1 = arith.constant 0 : index
    %3 = vector.load %arg7[%c0, %c0_1] : memref<32x32xf32, #tpu.memory_space<vmem>>, vector<32x32xf32>
    %c0_2 = arith.constant 0 : index
    %c0_3 = arith.constant 0 : index
    %4 = vector.load %arg3[%c0_2, %c0_3] : memref<32x256xbf16, #tpu.memory_space<vmem>>, vector<32x256xbf16>
    %c0_4 = arith.constant 0 : index
    %c0_5 = arith.constant 0 : index
    %5 = vector.load %arg4[%c0_4, %c0_5] : memref<256x32xbf16, #tpu.memory_space<vmem>>, vector<256x32xbf16>
    %cst = arith.constant dense<0.000000e+00> : vector<32x32xf32>
    %6 = tpu.matmul %4, %5, %cst {dimension_numbers = #tpu.dot_dimension_numbers<[1], [0], [0], [1], [0, 0, 1, 1], [], []>} : vector<32x256xbf16>, vector<256x32xbf16>, vector<32x32xf32> -> vector<32x32xf32>
    %7 = arith.addf %3, %6 : vector<32x32xf32>
    %c0_6 = arith.constant 0 : index
    %c0_7 = arith.constant 0 : index
    %8 = vector.load %arg7[%c0_6, %c0_7] : memref<32x32xf32, #tpu.memory_space<vmem>>, vector<32x32xf32>
    tpu.vector_store %arg7[%c0_6, %c0_7], %7 {strides = array<i32>} : memref<32x32xf32, #tpu.memory_space<vmem>>, vector<32x32xf32>,
    %c2_i32 = arith.constant 2 : i32
    %9 = arith.cmpi eq, %arg2, %c2_i32 : i32
    %10 = arith.extui %9 : i1 to i32
    %c0_i32_8 = arith.constant 0 : i32
    %11 = arith.cmpi ne, %10, %c0_i32_8 : i32
    scf.if %11 {
      %c0_9 = arith.constant 0 : index
      %c0_10 = arith.constant 0 : index
      %12 = vector.load %arg7[%c0_9, %c0_10] : memref<32x32xf32, #tpu.memory_space<vmem>>, vector<32x32xf32>
      %c0_11 = arith.constant 0 : index
      %c0_12 = arith.constant 0 : index
      %13 = vector.load %arg5[%c0_11, %c0_12] : memref<1x32xf32, #tpu.memory_space<vmem>>, vector<1x32xf32>
      %14 = vector.broadcast %13 : vector<1x32xf32> to vector<32x32xf32>
      %15 = arith.addf %12, %14 : vector<32x32xf32>
      %16 = arith.truncf %15 : vector<32x32xf32> to vector<32x32xbf16>
      %c0_13 = arith.constant 0 : index
      %c0_14 = arith.constant 0 : index
      %17 = vector.load %arg6[%c0_13, %c0_14] : memref<32x32xbf16, #tpu.memory_space<vmem>>, vector<32x32xbf16>
      tpu.vector_store %arg6[%c0_13, %c0_14], %16 {strides = array<i32>} : memref<32x32xbf16, #tpu.memory_space<vmem>>, vector<32x32xbf16>,
    } else {
    }
    return
  }
  func.func @transform_0(%arg0: i32, %arg1: i32, %arg2: i32) -> (i32, i32) {
    %c0_i32 = arith.constant 0 : i32
    return %arg0, %arg2 : i32, i32
  }
  func.func @transform_1(%arg0: i32, %arg1: i32, %arg2: i32) -> (i32, i32) {
    %c0_i32 = arith.constant 0 : i32
    return %arg2, %arg1 : i32, i32
  }
  func.func @transform_2(%arg0: i32, %arg1: i32, %arg2: i32) -> (i32, i32) {
    %c0_i32 = arith.constant 0 : i32
    %c0_i32_0 = arith.constant 0 : i32
    return %c0_i32, %arg1 : i32, i32
  }
  func.func @transform_3(%arg0: i32, %arg1: i32, %arg2: i32) -> (i32, i32) {
    %c0_i32 = arith.constant 0 : i32
    return %arg0, %arg1 : i32, i32
  }
}

module attributes {stable_mosaic.version = 11 : i64} {
  func.func @_attention_kernel(%arg0: i32, %arg1: memref<1x17x96xbf16, #tpu.memory_space<vmem>>, %arg2: memref<1x17x32xbf16, #tpu.memory_space<vmem>>) attributes {dimension_semantics = [#tpu.dimension_semantics<parallel>], iteration_bounds = array<i64: 2>, scalar_prefetch = 0 : i64, scratch_operands = 0 : i64, tpu.core_type = #tpu.core_type<tc>, window_params = [{transform_indices = @transform_0, window_bounds = array<i64: 1, 17, 96>}, {transform_indices = @transform_1, window_bounds = array<i64: 1, 17, 32>}]} {
    %c0 = arith.constant 0 : index
    %c0_0 = arith.constant 0 : index
    %c0_1 = arith.constant 0 : index
    %0 = vector.load %arg1[%c0, %c0_0, %c0_1] : memref<1x17x96xbf16, #tpu.memory_space<vmem>>, vector<1x17x96xbf16>
    %1 = vector.shape_cast %0 : vector<1x17x96xbf16> to vector<17x96xbf16>
    %2 = vector.extract_strided_slice %1 {offsets = [0, 0], sizes = [17, 16], strides = [1, 1]} : vector<17x96xbf16> to vector<17x16xbf16>
    %3 = vector.extract_strided_slice %1 {offsets = [0, 32], sizes = [17, 16], strides = [1, 1]} : vector<17x96xbf16> to vector<17x16xbf16>
    %4 = vector.extract_strided_slice %1 {offsets = [0, 64], sizes = [17, 16], strides = [1, 1]} : vector<17x96xbf16> to vector<17x16xbf16>
    %cst = arith.constant dense<0.000000e+00> : vector<17x17xf32>
    %5 = tpu.matmul %2, %3, %cst {dimension_numbers = #tpu.dot_dimension_numbers<[1], [1], [0], [0], [0, 0, 1, 0], [], []>} : vector<17x16xbf16>, vector<17x16xbf16>, vector<17x17xf32> -> vector<17x17xf32>
    %cst_2 = arith.constant 2.500000e-01 : f32
    %6 = vector.broadcast %cst_2 : f32 to vector<17x17xf32>
    %7 = arith.mulf %5, %6 : vector<17x17xf32>
    %cst_3 = arith.constant dense<0xFF800000> : vector<17xf32>
    %8 = vector.multi_reduction <maximumf>, %7, %cst_3 [1] : vector<17x17xf32> to vector<17xf32>
    %9 = vector.shape_cast %8 : vector<17xf32> to vector<17x1xf32>
    %10 = vector.broadcast %9 : vector<17x1xf32> to vector<17x17xf32>
    %11 = arith.subf %7, %10 : vector<17x17xf32>
    %12 = math.exp %11 : vector<17x17xf32>
    %cst_4 = arith.constant dense<0.000000e+00> : vector<17xf32>
    %13 = vector.multi_reduction <add>, %12, %cst_4 [1] : vector<17x17xf32> to vector<17xf32>
    %14 = vector.shape_cast %13 : vector<17xf32> to vector<17x1xf32>
    %15 = tpu.reciprocal %14 {approx = true} : vector<17x1xf32> -> vector<17x1xf32>
    %16 = vector.broadcast %15 : vector<17x1xf32> to vector<17x17xf32>
    %17 = arith.mulf %12, %16 : vector<17x17xf32>
    %18 = arith.truncf %17 : vector<17x17xf32> to vector<17x17xbf16>
    %cst_5 = arith.constant dense<0.000000e+00> : vector<17x16xf32>
    %19 = tpu.matmul %18, %4, %cst_5 {dimension_numbers = #tpu.dot_dimension_numbers<[1], [0], [0], [1], [0, 0, 1, 1], [], []>} : vector<17x17xbf16>, vector<17x16xbf16>, vector<17x16xf32> -> vector<17x16xf32>
    %20 = vector.extract_strided_slice %1 {offsets = [0, 16], sizes = [17, 16], strides = [1, 1]} : vector<17x96xbf16> to vector<17x16xbf16>
    %21 = vector.extract_strided_slice %1 {offsets = [0, 48], sizes = [17, 16], strides = [1, 1]} : vector<17x96xbf16> to vector<17x16xbf16>
    %22 = vector.extract_strided_slice %1 {offsets = [0, 80], sizes = [17, 16], strides = [1, 1]} : vector<17x96xbf16> to vector<17x16xbf16>
    %cst_6 = arith.constant dense<0.000000e+00> : vector<17x17xf32>
    %23 = tpu.matmul %20, %21, %cst_6 {dimension_numbers = #tpu.dot_dimension_numbers<[1], [1], [0], [0], [0, 0, 1, 0], [], []>} : vector<17x16xbf16>, vector<17x16xbf16>, vector<17x17xf32> -> vector<17x17xf32>
    %cst_7 = arith.constant 2.500000e-01 : f32
    %24 = vector.broadcast %cst_7 : f32 to vector<17x17xf32>
    %25 = arith.mulf %23, %24 : vector<17x17xf32>
    %cst_8 = arith.constant dense<0xFF800000> : vector<17xf32>
    %26 = vector.multi_reduction <maximumf>, %25, %cst_8 [1] : vector<17x17xf32> to vector<17xf32>
    %27 = vector.shape_cast %26 : vector<17xf32> to vector<17x1xf32>
    %28 = vector.broadcast %27 : vector<17x1xf32> to vector<17x17xf32>
    %29 = arith.subf %25, %28 : vector<17x17xf32>
    %30 = math.exp %29 : vector<17x17xf32>
    %cst_9 = arith.constant dense<0.000000e+00> : vector<17xf32>
    %31 = vector.multi_reduction <add>, %30, %cst_9 [1] : vector<17x17xf32> to vector<17xf32>
    %32 = vector.shape_cast %31 : vector<17xf32> to vector<17x1xf32>
    %33 = tpu.reciprocal %32 {approx = true} : vector<17x1xf32> -> vector<17x1xf32>
    %34 = vector.broadcast %33 : vector<17x1xf32> to vector<17x17xf32>
    %35 = arith.mulf %30, %34 : vector<17x17xf32>
    %36 = arith.truncf %35 : vector<17x17xf32> to vector<17x17xbf16>
    %cst_10 = arith.constant dense<0.000000e+00> : vector<17x16xf32>
    %37 = tpu.matmul %36, %22, %cst_10 {dimension_numbers = #tpu.dot_dimension_numbers<[1], [0], [0], [1], [0, 0, 1, 1], [], []>} : vector<17x17xbf16>, vector<17x16xbf16>, vector<17x16xf32> -> vector<17x16xf32>
    %38 = tpu.concatenate %19, %37 in 1 : vector<17x16xf32>, vector<17x16xf32> -> vector<17x32xf32>
    %39 = arith.truncf %38 : vector<17x32xf32> to vector<17x32xbf16>
    %c0_11 = arith.constant 0 : index
    %c0_12 = arith.constant 0 : index
    %c0_13 = arith.constant 0 : index
    %40 = vector.load %arg2[%c0_11, %c0_12, %c0_13] : memref<1x17x32xbf16, #tpu.memory_space<vmem>>, vector<1x17x32xbf16>
    %41 = vector.shape_cast %40 : vector<1x17x32xbf16> to vector<17x32xbf16>
    %42 = vector.shape_cast %39 : vector<17x32xbf16> to vector<1x17x32xbf16>
    tpu.vector_store %arg2[%c0_11, %c0_12, %c0_13], %42 {strides = array<i32>} : memref<1x17x32xbf16, #tpu.memory_space<vmem>>, vector<1x17x32xbf16>,
    return
  }
  func.func @transform_0(%arg0: i32) -> (i32, i32, i32) {
    %c0_i32 = arith.constant 0 : i32
    %c0_i32_0 = arith.constant 0 : i32
    %c0_i32_1 = arith.constant 0 : i32
    return %arg0, %c0_i32, %c0_i32_0 : i32, i32, i32
  }
  func.func @transform_1(%arg0: i32) -> (i32, i32, i32) {
    %c0_i32 = arith.constant 0 : i32
    %c0_i32_0 = arith.constant 0 : i32
    %c0_i32_1 = arith.constant 0 : i32
    return %arg0, %c0_i32, %c0_i32_0 : i32, i32, i32
  }
}

module attributes {stable_mosaic.version = 11 : i64} {
  func.func @_ln_matmul_kernel(%arg0: i32, %arg1: i32, %arg2: memref<34x32xbf16, #tpu.memory_space<vmem>>, %arg3: memref<1x32xf32, #tpu.memory_space<vmem>>, %arg4: memref<1x32xf32, #tpu.memory_space<vmem>>, %arg5: memref<32x96xbf16, #tpu.memory_space<vmem>>, %arg6: memref<1x96xf32, #tpu.memory_space<vmem>>, %arg7: memref<34x96xbf16, #tpu.memory_space<vmem>>) attributes {dimension_semantics = [#tpu.dimension_semantics<parallel>, #tpu.dimension_semantics<parallel>], iteration_bounds = array<i64: 1, 1>, scalar_prefetch = 0 : i64, scratch_operands = 0 : i64, tpu.core_type = #tpu.core_type<tc>, window_params = [{transform_indices = @transform_0, window_bounds = array<i64: 34, 32>}, {pipeline_mode = #tpu.pipeline_mode<synchronous>, transform_indices = @transform_1, window_bounds = array<i64: 1, 32>}, {pipeline_mode = #tpu.pipeline_mode<synchronous>, transform_indices = @transform_2, window_bounds = array<i64: 1, 32>}, {transform_indices = @transform_3, window_bounds = array<i64: 32, 96>}, {transform_indices = @transform_4, window_bounds = array<i64: 1, 96>}, {transform_indices = @transform_5, window_bounds = array<i64: 34, 96>}]} {
    %c0 = arith.constant 0 : index
    %c0_0 = arith.constant 0 : index
    %0 = vector.load %arg2[%c0, %c0_0] : memref<34x32xbf16, #tpu.memory_space<vmem>>, vector<34x32xbf16>
    %1 = arith.extf %0 : vector<34x32xbf16> to vector<34x32xf32>
    %cst = arith.constant dense<0.000000e+00> : vector<34xf32>
    %2 = vector.multi_reduction <add>, %1, %cst [1] : vector<34x32xf32> to vector<34xf32>
    %3 = vector.shape_cast %2 : vector<34xf32> to vector<34x1xf32>
    %cst_1 = arith.constant 3.200000e+01 : f32
    %4 = vector.broadcast %cst_1 : f32 to vector<34x1xf32>
    %5 = arith.divf %3, %4 : vector<34x1xf32>
    %6 = vector.broadcast %5 : vector<34x1xf32> to vector<34x32xf32>
    %7 = arith.subf %1, %6 : vector<34x32xf32>
    %8 = arith.mulf %7, %7 : vector<34x32xf32>
    %cst_2 = arith.constant dense<0.000000e+00> : vector<34xf32>
    %9 = vector.multi_reduction <add>, %8, %cst_2 [1] : vector<34x32xf32> to vector<34xf32>
    %10 = vector.shape_cast %9 : vector<34xf32> to vector<34x1xf32>
    %cst_3 = arith.constant 3.200000e+01 : f32
    %11 = vector.broadcast %cst_3 : f32 to vector<34x1xf32>
    %12 = arith.divf %10, %11 : vector<34x1xf32>
    %13 = vector.broadcast %5 : vector<34x1xf32> to vector<34x32xf32>
    %14 = arith.subf %1, %13 : vector<34x32xf32>
    %cst_4 = arith.constant 9.99999997E-7 : f32
    %15 = vector.broadcast %cst_4 : f32 to vector<34x1xf32>
    %16 = arith.addf %12, %15 : vector<34x1xf32>
    %17 = math.rsqrt %16 : vector<34x1xf32>
    %18 = vector.broadcast %17 : vector<34x1xf32> to vector<34x32xf32>
    %19 = arith.mulf %14, %18 : vector<34x32xf32>
    %c0_5 = arith.constant 0 : index
    %c0_6 = arith.constant 0 : index
    %20 = vector.load %arg3[%c0_5, %c0_6] : memref<1x32xf32, #tpu.memory_space<vmem>>, vector<1x32xf32>
    %21 = vector.broadcast %20 : vector<1x32xf32> to vector<34x32xf32>
    %22 = arith.mulf %19, %21 : vector<34x32xf32>
    %c0_7 = arith.constant 0 : index
    %c0_8 = arith.constant 0 : index
    %23 = vector.load %arg4[%c0_7, %c0_8] : memref<1x32xf32, #tpu.memory_space<vmem>>, vector<1x32xf32>
    %24 = vector.broadcast %23 : vector<1x32xf32> to vector<34x32xf32>
    %25 = arith.addf %22, %24 : vector<34x32xf32>
    %26 = arith.truncf %25 : vector<34x32xf32> to vector<34x32xbf16>
    %c0_9 = arith.constant 0 : index
    %c0_10 = arith.constant 0 : index
    %27 = vector.load %arg5[%c0_9, %c0_10] : memref<32x96xbf16, #tpu.memory_space<vmem>>, vector<32x96xbf16>
    %cst_11 = arith.constant dense<0.000000e+00> : vector<34x96xf32>
    %28 = tpu.matmul %26, %27, %cst_11 {dimension_numbers = #tpu.dot_dimension_numbers<[1], [0], [0], [1], [0, 0, 1, 1], [], []>} : vector<34x32xbf16>, vector<32x96xbf16>, vector<34x96xf32> -> vector<34x96xf32>
    %c0_12 = arith.constant 0 : index
    %c0_13 = arith.constant 0 : index
    %29 = vector.load %arg6[%c0_12, %c0_13] : memref<1x96xf32, #tpu.memory_space<vmem>>, vector<1x96xf32>
    %30 = vector.broadcast %29 : vector<1x96xf32> to vector<34x96xf32>
    %31 = arith.addf %28, %30 : vector<34x96xf32>
    %32 = arith.truncf %31 : vector<34x96xf32> to vector<34x96xbf16>
    %c0_14 = arith.constant 0 : index
    %c0_15 = arith.constant 0 : index
    %33 = vector.load %arg7[%c0_14, %c0_15] : memref<34x96xbf16, #tpu.memory_space<vmem>>, vector<34x96xbf16>
    tpu.vector_store %arg7[%c0_14, %c0_15], %32 {strides = array<i32>} : memref<34x96xbf16, #tpu.memory_space<vmem>>, vector<34x96xbf16>,
    return
  }
  func.func @transform_0(%arg0: i32, %arg1: i32) -> (i32, i32) {
    %c0_i32 = arith.constant 0 : i32
    %c0_i32_0 = arith.constant 0 : i32
    return %arg0, %c0_i32 : i32, i32
  }
  func.func @transform_1(%arg0: i32, %arg1: i32) -> (i32, i32) {
    %c0_i32 = arith.constant 0 : i32
    %c0_i32_0 = arith.constant 0 : i32
    %c0_i32_1 = arith.constant 0 : i32
    return %c0_i32, %c0_i32_0 : i32, i32
  }
  func.func @transform_2(%arg0: i32, %arg1: i32) -> (i32, i32) {
    %c0_i32 = arith.constant 0 : i32
    %c0_i32_0 = arith.constant 0 : i32
    %c0_i32_1 = arith.constant 0 : i32
    return %c0_i32, %c0_i32_0 : i32, i32
  }
  func.func @transform_3(%arg0: i32, %arg1: i32) -> (i32, i32) {
    %c0_i32 = arith.constant 0 : i32
    %c0_i32_0 = arith.constant 0 : i32
    return %c0_i32, %arg1 : i32, i32
  }
  func.func @transform_4(%arg0: i32, %arg1: i32) -> (i32, i32) {
    %c0_i32 = arith.constant 0 : i32
    %c0_i32_0 = arith.constant 0 : i32
    return %c0_i32, %arg1 : i32, i32
  }
  func.func @transform_5(%arg0: i32, %arg1: i32) -> (i32, i32) {
    %c0_i32 = arith.constant 0 : i32
    return %arg0, %arg1 : i32, i32
  }
}

module attributes {stable_mosaic.version = 11 : i64} {
  func.func @_matmul_bias_res_kernel(%arg0: i32, %arg1: i32, %arg2: i32, %arg3: memref<34x32xbf16, #tpu.memory_space<vmem>>, %arg4: memref<32x32xbf16, #tpu.memory_space<vmem>>, %arg5: memref<1x32xf32, #tpu.memory_space<vmem>>, %arg6: memref<34x32xbf16, #tpu.memory_space<vmem>>, %arg7: memref<34x32xbf16, #tpu.memory_space<vmem>>, %arg8: memref<34x32xf32, #tpu.memory_space<vmem>>) attributes {dimension_semantics = [#tpu.dimension_semantics<parallel>, #tpu.dimension_semantics<parallel>, #tpu.dimension_semantics<arbitrary>], iteration_bounds = array<i64: 1, 1, 1>, scalar_prefetch = 0 : i64, scratch_operands = 1 : i64, tpu.core_type = #tpu.core_type<tc>, window_params = [{transform_indices = @transform_0, window_bounds = array<i64: 34, 32>}, {transform_indices = @transform_1, window_bounds = array<i64: 32, 32>}, {transform_indices = @transform_2, window_bounds = array<i64: 1, 32>}, {transform_indices = @transform_3, window_bounds = array<i64: 34, 32>}, {transform_indices = @transform_4, window_bounds = array<i64: 34, 32>}]} {
    %c0_i32 = arith.constant 0 : i32
    %0 = arith.cmpi eq, %arg2, %c0_i32 : i32
    %1 = arith.extui %0 : i1 to i32
    %c0_i32_0 = arith.constant 0 : i32
    %2 = arith.cmpi ne, %1, %c0_i32_0 : i32
    scf.if %2 {
      %cst_10 = arith.constant 0.000000e+00 : f32
      %12 = vector.broadcast %cst_10 : f32 to vector<34x32xf32>
      %c0_11 = arith.constant 0 : index
      %c0_12 = arith.constant 0 : index
      %13 = vector.load %arg8[%c0_11, %c0_12] : memref<34x32xf32, #tpu.memory_space<vmem>>, vector<34x32xf32>
      tpu.vector_store %arg8[%c0_11, %c0_12], %12 {strides = array<i32>} : memref<34x32xf32, #tpu.memory_space<vmem>>, vector<34x32xf32>,
    } else {
    }
    %c0 = arith.constant 0 : index
    %c0_1 = arith.constant 0 : index
    %3 = vector.load %arg8[%c0, %c0_1] : memref<34x32xf32, #tpu.memory_space<vmem>>, vector<34x32xf32>
    %c0_2 = arith.constant 0 : index
    %c0_3 = arith.constant 0 : index
    %4 = vector.load %arg3[%c0_2, %c0_3] : memref<34x32xbf16, #tpu.memory_space<vmem>>, vector<34x32xbf16>
    %c0_4 = arith.constant 0 : index
    %c0_5 = arith.constant 0 : index
    %5 = vector.load %arg4[%c0_4, %c0_5] : memref<32x32xbf16, #tpu.memory_space<vmem>>, vector<32x32xbf16>
    %cst = arith.constant dense<0.000000e+00> : vector<34x32xf32>
    %6 = tpu.matmul %4, %5, %cst {dimension_numbers = #tpu.dot_dimension_numbers<[1], [0], [0], [1], [0, 0, 1, 1], [], []>} : vector<34x32xbf16>, vector<32x32xbf16>, vector<34x32xf32> -> vector<34x32xf32>
    %7 = arith.addf %3, %6 : vector<34x32xf32>
    %c0_6 = arith.constant 0 : index
    %c0_7 = arith.constant 0 : index
    %8 = vector.load %arg8[%c0_6, %c0_7] : memref<34x32xf32, #tpu.memory_space<vmem>>, vector<34x32xf32>
    tpu.vector_store %arg8[%c0_6, %c0_7], %7 {strides = array<i32>} : memref<34x32xf32, #tpu.memory_space<vmem>>, vector<34x32xf32>,
    %c0_i32_8 = arith.constant 0 : i32
    %9 = arith.cmpi eq, %arg2, %c0_i32_8 : i32
    %10 = arith.extui %9 : i1 to i32
    %c0_i32_9 = arith.constant 0 : i32
    %11 = arith.cmpi ne, %10, %c0_i32_9 : i32
    scf.if %11 {
      %c0_10 = arith.constant 0 : index
      %c0_11 = arith.constant 0 : index
      %12 = vector.load %arg8[%c0_10, %c0_11] : memref<34x32xf32, #tpu.memory_space<vmem>>, vector<34x32xf32>
      %c0_12 = arith.constant 0 : index
      %c0_13 = arith.constant 0 : index
      %13 = vector.load %arg5[%c0_12, %c0_13] : memref<1x32xf32, #tpu.memory_space<vmem>>, vector<1x32xf32>
      %14 = vector.broadcast %13 : vector<1x32xf32> to vector<34x32xf32>
      %15 = arith.addf %12, %14 : vector<34x32xf32>
      %c0_14 = arith.constant 0 : index
      %c0_15 = arith.constant 0 : index
      %16 = vector.load %arg6[%c0_14, %c0_15] : memref<34x32xbf16, #tpu.memory_space<vmem>>, vector<34x32xbf16>
      %17 = arith.extf %16 : vector<34x32xbf16> to vector<34x32xf32>
      %18 = arith.addf %15, %17 : vector<34x32xf32>
      %19 = arith.truncf %18 : vector<34x32xf32> to vector<34x32xbf16>
      %c0_16 = arith.constant 0 : index
      %c0_17 = arith.constant 0 : index
      %20 = vector.load %arg7[%c0_16, %c0_17] : memref<34x32xbf16, #tpu.memory_space<vmem>>, vector<34x32xbf16>
      tpu.vector_store %arg7[%c0_16, %c0_17], %19 {strides = array<i32>} : memref<34x32xbf16, #tpu.memory_space<vmem>>, vector<34x32xbf16>,
    } else {
    }
    return
  }
  func.func @transform_0(%arg0: i32, %arg1: i32, %arg2: i32) -> (i32, i32) {
    %c0_i32 = arith.constant 0 : i32
    return %arg0, %arg2 : i32, i32
  }
  func.func @transform_1(%arg0: i32, %arg1: i32, %arg2: i32) -> (i32, i32) {
    %c0_i32 = arith.constant 0 : i32
    return %arg2, %arg1 : i32, i32
  }
  func.func @transform_2(%arg0: i32, %arg1: i32, %arg2: i32) -> (i32, i32) {
    %c0_i32 = arith.constant 0 : i32
    %c0_i32_0 = arith.constant 0 : i32
    return %c0_i32, %arg1 : i32, i32
  }
  func.func @transform_3(%arg0: i32, %arg1: i32, %arg2: i32) -> (i32, i32) {
    %c0_i32 = arith.constant 0 : i32
    return %arg0, %arg1 : i32, i32
  }
  func.func @transform_4(%arg0: i32, %arg1: i32, %arg2: i32) -> (i32, i32) {
    %c0_i32 = arith.constant 0 : i32
    return %arg0, %arg1 : i32, i32
  }
}

module attributes {stable_mosaic.version = 11 : i64} {
  func.func @_ln_matmul_kernel(%arg0: i32, %arg1: i32, %arg2: memref<34x32xbf16, #tpu.memory_space<vmem>>, %arg3: memref<1x32xf32, #tpu.memory_space<vmem>>, %arg4: memref<1x32xf32, #tpu.memory_space<vmem>>, %arg5: memref<32x128xbf16, #tpu.memory_space<vmem>>, %arg6: memref<1x128xf32, #tpu.memory_space<vmem>>, %arg7: memref<34x128xbf16, #tpu.memory_space<vmem>>) attributes {dimension_semantics = [#tpu.dimension_semantics<parallel>, #tpu.dimension_semantics<parallel>], iteration_bounds = array<i64: 1, 1>, scalar_prefetch = 0 : i64, scratch_operands = 0 : i64, tpu.core_type = #tpu.core_type<tc>, window_params = [{transform_indices = @transform_0, window_bounds = array<i64: 34, 32>}, {pipeline_mode = #tpu.pipeline_mode<synchronous>, transform_indices = @transform_1, window_bounds = array<i64: 1, 32>}, {pipeline_mode = #tpu.pipeline_mode<synchronous>, transform_indices = @transform_2, window_bounds = array<i64: 1, 32>}, {transform_indices = @transform_3, window_bounds = array<i64: 32, 128>}, {transform_indices = @transform_4, window_bounds = array<i64: 1, 128>}, {transform_indices = @transform_5, window_bounds = array<i64: 34, 128>}]} {
    %c0 = arith.constant 0 : index
    %c0_0 = arith.constant 0 : index
    %0 = vector.load %arg2[%c0, %c0_0] : memref<34x32xbf16, #tpu.memory_space<vmem>>, vector<34x32xbf16>
    %1 = arith.extf %0 : vector<34x32xbf16> to vector<34x32xf32>
    %cst = arith.constant dense<0.000000e+00> : vector<34xf32>
    %2 = vector.multi_reduction <add>, %1, %cst [1] : vector<34x32xf32> to vector<34xf32>
    %3 = vector.shape_cast %2 : vector<34xf32> to vector<34x1xf32>
    %cst_1 = arith.constant 3.200000e+01 : f32
    %4 = vector.broadcast %cst_1 : f32 to vector<34x1xf32>
    %5 = arith.divf %3, %4 : vector<34x1xf32>
    %6 = vector.broadcast %5 : vector<34x1xf32> to vector<34x32xf32>
    %7 = arith.subf %1, %6 : vector<34x32xf32>
    %8 = arith.mulf %7, %7 : vector<34x32xf32>
    %cst_2 = arith.constant dense<0.000000e+00> : vector<34xf32>
    %9 = vector.multi_reduction <add>, %8, %cst_2 [1] : vector<34x32xf32> to vector<34xf32>
    %10 = vector.shape_cast %9 : vector<34xf32> to vector<34x1xf32>
    %cst_3 = arith.constant 3.200000e+01 : f32
    %11 = vector.broadcast %cst_3 : f32 to vector<34x1xf32>
    %12 = arith.divf %10, %11 : vector<34x1xf32>
    %13 = vector.broadcast %5 : vector<34x1xf32> to vector<34x32xf32>
    %14 = arith.subf %1, %13 : vector<34x32xf32>
    %cst_4 = arith.constant 9.99999997E-7 : f32
    %15 = vector.broadcast %cst_4 : f32 to vector<34x1xf32>
    %16 = arith.addf %12, %15 : vector<34x1xf32>
    %17 = math.rsqrt %16 : vector<34x1xf32>
    %18 = vector.broadcast %17 : vector<34x1xf32> to vector<34x32xf32>
    %19 = arith.mulf %14, %18 : vector<34x32xf32>
    %c0_5 = arith.constant 0 : index
    %c0_6 = arith.constant 0 : index
    %20 = vector.load %arg3[%c0_5, %c0_6] : memref<1x32xf32, #tpu.memory_space<vmem>>, vector<1x32xf32>
    %21 = vector.broadcast %20 : vector<1x32xf32> to vector<34x32xf32>
    %22 = arith.mulf %19, %21 : vector<34x32xf32>
    %c0_7 = arith.constant 0 : index
    %c0_8 = arith.constant 0 : index
    %23 = vector.load %arg4[%c0_7, %c0_8] : memref<1x32xf32, #tpu.memory_space<vmem>>, vector<1x32xf32>
    %24 = vector.broadcast %23 : vector<1x32xf32> to vector<34x32xf32>
    %25 = arith.addf %22, %24 : vector<34x32xf32>
    %26 = arith.truncf %25 : vector<34x32xf32> to vector<34x32xbf16>
    %c0_9 = arith.constant 0 : index
    %c0_10 = arith.constant 0 : index
    %27 = vector.load %arg5[%c0_9, %c0_10] : memref<32x128xbf16, #tpu.memory_space<vmem>>, vector<32x128xbf16>
    %cst_11 = arith.constant dense<0.000000e+00> : vector<34x128xf32>
    %28 = tpu.matmul %26, %27, %cst_11 {dimension_numbers = #tpu.dot_dimension_numbers<[1], [0], [0], [1], [0, 0, 1, 1], [], []>} : vector<34x32xbf16>, vector<32x128xbf16>, vector<34x128xf32> -> vector<34x128xf32>
    %c0_12 = arith.constant 0 : index
    %c0_13 = arith.constant 0 : index
    %29 = vector.load %arg6[%c0_12, %c0_13] : memref<1x128xf32, #tpu.memory_space<vmem>>, vector<1x128xf32>
    %30 = vector.broadcast %29 : vector<1x128xf32> to vector<34x128xf32>
    %31 = arith.addf %28, %30 : vector<34x128xf32>
    %cst_14 = arith.constant 5.000000e-01 : f32
    %32 = vector.broadcast %cst_14 : f32 to vector<34x128xf32>
    %33 = arith.mulf %32, %31 : vector<34x128xf32>
    %cst_15 = arith.constant 4.471500e-02 : f32
    %34 = vector.broadcast %cst_15 : f32 to vector<34x128xf32>
    %35 = arith.mulf %34, %31 : vector<34x128xf32>
    %36 = arith.mulf %35, %31 : vector<34x128xf32>
    %37 = arith.mulf %36, %31 : vector<34x128xf32>
    %38 = arith.addf %31, %37 : vector<34x128xf32>
    %cst_16 = arith.constant 0.797884583 : f32
    %39 = vector.broadcast %cst_16 : f32 to vector<34x128xf32>
    %40 = arith.mulf %39, %38 : vector<34x128xf32>
    %41 = math.tanh %40 : vector<34x128xf32>
    %cst_17 = arith.constant 1.000000e+00 : f32
    %42 = vector.broadcast %cst_17 : f32 to vector<34x128xf32>
    %43 = arith.addf %42, %41 : vector<34x128xf32>
    %44 = arith.mulf %33, %43 : vector<34x128xf32>
    %45 = arith.truncf %44 : vector<34x128xf32> to vector<34x128xbf16>
    %c0_18 = arith.constant 0 : index
    %c0_19 = arith.constant 0 : index
    %46 = vector.load %arg7[%c0_18, %c0_19] : memref<34x128xbf16, #tpu.memory_space<vmem>>, vector<34x128xbf16>
    tpu.vector_store %arg7[%c0_18, %c0_19], %45 {strides = array<i32>} : memref<34x128xbf16, #tpu.memory_space<vmem>>, vector<34x128xbf16>,
    return
  }
  func.func @transform_0(%arg0: i32, %arg1: i32) -> (i32, i32) {
    %c0_i32 = arith.constant 0 : i32
    %c0_i32_0 = arith.constant 0 : i32
    return %arg0, %c0_i32 : i32, i32
  }
  func.func @transform_1(%arg0: i32, %arg1: i32) -> (i32, i32) {
    %c0_i32 = arith.constant 0 : i32
    %c0_i32_0 = arith.constant 0 : i32
    %c0_i32_1 = arith.constant 0 : i32
    return %c0_i32, %c0_i32_0 : i32, i32
  }
  func.func @transform_2(%arg0: i32, %arg1: i32) -> (i32, i32) {
    %c0_i32 = arith.constant 0 : i32
    %c0_i32_0 = arith.constant 0 : i32
    %c0_i32_1 = arith.constant 0 : i32
    return %c0_i32, %c0_i32_0 : i32, i32
  }
  func.func @transform_3(%arg0: i32, %arg1: i32) -> (i32, i32) {
    %c0_i32 = arith.constant 0 : i32
    %c0_i32_0 = arith.constant 0 : i32
    return %c0_i32, %arg1 : i32, i32
  }
  func.func @transform_4(%arg0: i32, %arg1: i32) -> (i32, i32) {
    %c0_i32 = arith.constant 0 : i32
    %c0_i32_0 = arith.constant 0 : i32
    return %c0_i32, %arg1 : i32, i32
  }
  func.func @transform_5(%arg0: i32, %arg1: i32) -> (i32, i32) {
    %c0_i32 = arith.constant 0 : i32
    return %arg0, %arg1 : i32, i32
  }
}

module attributes {stable_mosaic.version = 11 : i64} {
  func.func @_matmul_bias_res_kernel(%arg0: i32, %arg1: i32, %arg2: i32, %arg3: memref<34x128xbf16, #tpu.memory_space<vmem>>, %arg4: memref<128x32xbf16, #tpu.memory_space<vmem>>, %arg5: memref<1x32xf32, #tpu.memory_space<vmem>>, %arg6: memref<34x32xbf16, #tpu.memory_space<vmem>>, %arg7: memref<34x32xbf16, #tpu.memory_space<vmem>>, %arg8: memref<34x32xf32, #tpu.memory_space<vmem>>) attributes {dimension_semantics = [#tpu.dimension_semantics<parallel>, #tpu.dimension_semantics<parallel>, #tpu.dimension_semantics<arbitrary>], iteration_bounds = array<i64: 1, 1, 1>, scalar_prefetch = 0 : i64, scratch_operands = 1 : i64, tpu.core_type = #tpu.core_type<tc>, window_params = [{transform_indices = @transform_0, window_bounds = array<i64: 34, 128>}, {transform_indices = @transform_1, window_bounds = array<i64: 128, 32>}, {transform_indices = @transform_2, window_bounds = array<i64: 1, 32>}, {transform_indices = @transform_3, window_bounds = array<i64: 34, 32>}, {transform_indices = @transform_4, window_bounds = array<i64: 34, 32>}]} {
    %c0_i32 = arith.constant 0 : i32
    %0 = arith.cmpi eq, %arg2, %c0_i32 : i32
    %1 = arith.extui %0 : i1 to i32
    %c0_i32_0 = arith.constant 0 : i32
    %2 = arith.cmpi ne, %1, %c0_i32_0 : i32
    scf.if %2 {
      %cst_10 = arith.constant 0.000000e+00 : f32
      %12 = vector.broadcast %cst_10 : f32 to vector<34x32xf32>
      %c0_11 = arith.constant 0 : index
      %c0_12 = arith.constant 0 : index
      %13 = vector.load %arg8[%c0_11, %c0_12] : memref<34x32xf32, #tpu.memory_space<vmem>>, vector<34x32xf32>
      tpu.vector_store %arg8[%c0_11, %c0_12], %12 {strides = array<i32>} : memref<34x32xf32, #tpu.memory_space<vmem>>, vector<34x32xf32>,
    } else {
    }
    %c0 = arith.constant 0 : index
    %c0_1 = arith.constant 0 : index
    %3 = vector.load %arg8[%c0, %c0_1] : memref<34x32xf32, #tpu.memory_space<vmem>>, vector<34x32xf32>
    %c0_2 = arith.constant 0 : index
    %c0_3 = arith.constant 0 : index
    %4 = vector.load %arg3[%c0_2, %c0_3] : memref<34x128xbf16, #tpu.memory_space<vmem>>, vector<34x128xbf16>
    %c0_4 = arith.constant 0 : index
    %c0_5 = arith.constant 0 : index
    %5 = vector.load %arg4[%c0_4, %c0_5] : memref<128x32xbf16, #tpu.memory_space<vmem>>, vector<128x32xbf16>
    %cst = arith.constant dense<0.000000e+00> : vector<34x32xf32>
    %6 = tpu.matmul %4, %5, %cst {dimension_numbers = #tpu.dot_dimension_numbers<[1], [0], [0], [1], [0, 0, 1, 1], [], []>} : vector<34x128xbf16>, vector<128x32xbf16>, vector<34x32xf32> -> vector<34x32xf32>
    %7 = arith.addf %3, %6 : vector<34x32xf32>
    %c0_6 = arith.constant 0 : index
    %c0_7 = arith.constant 0 : index
    %8 = vector.load %arg8[%c0_6, %c0_7] : memref<34x32xf32, #tpu.memory_space<vmem>>, vector<34x32xf32>
    tpu.vector_store %arg8[%c0_6, %c0_7], %7 {strides = array<i32>} : memref<34x32xf32, #tpu.memory_space<vmem>>, vector<34x32xf32>,
    %c0_i32_8 = arith.constant 0 : i32
    %9 = arith.cmpi eq, %arg2, %c0_i32_8 : i32
    %10 = arith.extui %9 : i1 to i32
    %c0_i32_9 = arith.constant 0 : i32
    %11 = arith.cmpi ne, %10, %c0_i32_9 : i32
    scf.if %11 {
      %c0_10 = arith.constant 0 : index
      %c0_11 = arith.constant 0 : index
      %12 = vector.load %arg8[%c0_10, %c0_11] : memref<34x32xf32, #tpu.memory_space<vmem>>, vector<34x32xf32>
      %c0_12 = arith.constant 0 : index
      %c0_13 = arith.constant 0 : index
      %13 = vector.load %arg5[%c0_12, %c0_13] : memref<1x32xf32, #tpu.memory_space<vmem>>, vector<1x32xf32>
      %14 = vector.broadcast %13 : vector<1x32xf32> to vector<34x32xf32>
      %15 = arith.addf %12, %14 : vector<34x32xf32>
      %c0_14 = arith.constant 0 : index
      %c0_15 = arith.constant 0 : index
      %16 = vector.load %arg6[%c0_14, %c0_15] : memref<34x32xbf16, #tpu.memory_space<vmem>>, vector<34x32xbf16>
      %17 = arith.extf %16 : vector<34x32xbf16> to vector<34x32xf32>
      %18 = arith.addf %15, %17 : vector<34x32xf32>
      %19 = arith.truncf %18 : vector<34x32xf32> to vector<34x32xbf16>
      %c0_16 = arith.constant 0 : index
      %c0_17 = arith.constant 0 : index
      %20 = vector.load %arg7[%c0_16, %c0_17] : memref<34x32xbf16, #tpu.memory_space<vmem>>, vector<34x32xbf16>
      tpu.vector_store %arg7[%c0_16, %c0_17], %19 {strides = array<i32>} : memref<34x32xbf16, #tpu.memory_space<vmem>>, vector<34x32xbf16>,
    } else {
    }
    return
  }
  func.func @transform_0(%arg0: i32, %arg1: i32, %arg2: i32) -> (i32, i32) {
    %c0_i32 = arith.constant 0 : i32
    return %arg0, %arg2 : i32, i32
  }
  func.func @transform_1(%arg0: i32, %arg1: i32, %arg2: i32) -> (i32, i32) {
    %c0_i32 = arith.constant 0 : i32
    return %arg2, %arg1 : i32, i32
  }
  func.func @transform_2(%arg0: i32, %arg1: i32, %arg2: i32) -> (i32, i32) {
    %c0_i32 = arith.constant 0 : i32
    %c0_i32_0 = arith.constant 0 : i32
    return %c0_i32, %arg1 : i32, i32
  }
  func.func @transform_3(%arg0: i32, %arg1: i32, %arg2: i32) -> (i32, i32) {
    %c0_i32 = arith.constant 0 : i32
    return %arg0, %arg1 : i32, i32
  }
  func.func @transform_4(%arg0: i32, %arg1: i32, %arg2: i32) -> (i32, i32) {
    %c0_i32 = arith.constant 0 : i32
    return %arg0, %arg1 : i32, i32
  }
}

module attributes {stable_mosaic.version = 11 : i64} {
  func.func @_layernorm_kernel(%arg0: i32, %arg1: memref<34x32xbf16, #tpu.memory_space<vmem>>, %arg2: memref<1x32xf32, #tpu.memory_space<vmem>>, %arg3: memref<1x32xf32, #tpu.memory_space<vmem>>, %arg4: memref<34x32xf32, #tpu.memory_space<vmem>>) attributes {dimension_semantics = [#tpu.dimension_semantics<parallel>], iteration_bounds = array<i64: 1>, scalar_prefetch = 0 : i64, scratch_operands = 0 : i64, tpu.core_type = #tpu.core_type<tc>, window_params = [{transform_indices = @transform_0, window_bounds = array<i64: 34, 32>}, {pipeline_mode = #tpu.pipeline_mode<synchronous>, transform_indices = @transform_1, window_bounds = array<i64: 1, 32>}, {pipeline_mode = #tpu.pipeline_mode<synchronous>, transform_indices = @transform_2, window_bounds = array<i64: 1, 32>}, {transform_indices = @transform_3, window_bounds = array<i64: 34, 32>}]} {
    %c0 = arith.constant 0 : index
    %c0_0 = arith.constant 0 : index
    %0 = vector.load %arg1[%c0, %c0_0] : memref<34x32xbf16, #tpu.memory_space<vmem>>, vector<34x32xbf16>
    %1 = arith.extf %0 : vector<34x32xbf16> to vector<34x32xf32>
    %cst = arith.constant dense<0.000000e+00> : vector<34xf32>
    %2 = vector.multi_reduction <add>, %1, %cst [1] : vector<34x32xf32> to vector<34xf32>
    %3 = vector.shape_cast %2 : vector<34xf32> to vector<34x1xf32>
    %cst_1 = arith.constant 3.200000e+01 : f32
    %4 = vector.broadcast %cst_1 : f32 to vector<34x1xf32>
    %5 = arith.divf %3, %4 : vector<34x1xf32>
    %6 = vector.broadcast %5 : vector<34x1xf32> to vector<34x32xf32>
    %7 = arith.subf %1, %6 : vector<34x32xf32>
    %8 = arith.mulf %7, %7 : vector<34x32xf32>
    %cst_2 = arith.constant dense<0.000000e+00> : vector<34xf32>
    %9 = vector.multi_reduction <add>, %8, %cst_2 [1] : vector<34x32xf32> to vector<34xf32>
    %10 = vector.shape_cast %9 : vector<34xf32> to vector<34x1xf32>
    %cst_3 = arith.constant 3.200000e+01 : f32
    %11 = vector.broadcast %cst_3 : f32 to vector<34x1xf32>
    %12 = arith.divf %10, %11 : vector<34x1xf32>
    %13 = vector.broadcast %5 : vector<34x1xf32> to vector<34x32xf32>
    %14 = arith.subf %1, %13 : vector<34x32xf32>
    %cst_4 = arith.constant 9.99999997E-7 : f32
    %15 = vector.broadcast %cst_4 : f32 to vector<34x1xf32>
    %16 = arith.addf %12, %15 : vector<34x1xf32>
    %17 = math.rsqrt %16 : vector<34x1xf32>
    %18 = vector.broadcast %17 : vector<34x1xf32> to vector<34x32xf32>
    %19 = arith.mulf %14, %18 : vector<34x32xf32>
    %c0_5 = arith.constant 0 : index
    %c0_6 = arith.constant 0 : index
    %20 = vector.load %arg2[%c0_5, %c0_6] : memref<1x32xf32, #tpu.memory_space<vmem>>, vector<1x32xf32>
    %21 = vector.broadcast %20 : vector<1x32xf32> to vector<34x32xf32>
    %22 = arith.mulf %19, %21 : vector<34x32xf32>
    %c0_7 = arith.constant 0 : index
    %c0_8 = arith.constant 0 : index
    %23 = vector.load %arg3[%c0_7, %c0_8] : memref<1x32xf32, #tpu.memory_space<vmem>>, vector<1x32xf32>
    %24 = vector.broadcast %23 : vector<1x32xf32> to vector<34x32xf32>
    %25 = arith.addf %22, %24 : vector<34x32xf32>
    %c0_9 = arith.constant 0 : index
    %c0_10 = arith.constant 0 : index
    %26 = vector.load %arg4[%c0_9, %c0_10] : memref<34x32xf32, #tpu.memory_space<vmem>>, vector<34x32xf32>
    tpu.vector_store %arg4[%c0_9, %c0_10], %25 {strides = array<i32>} : memref<34x32xf32, #tpu.memory_space<vmem>>, vector<34x32xf32>,
    return
  }
  func.func @transform_0(%arg0: i32) -> (i32, i32) {
    %c0_i32 = arith.constant 0 : i32
    %c0_i32_0 = arith.constant 0 : i32
    return %arg0, %c0_i32 : i32, i32
  }
  func.func @transform_1(%arg0: i32) -> (i32, i32) {
    %c0_i32 = arith.constant 0 : i32
    %c0_i32_0 = arith.constant 0 : i32
    %c0_i32_1 = arith.constant 0 : i32
    return %c0_i32, %c0_i32_0 : i32, i32
  }
  func.func @transform_2(%arg0: i32) -> (i32, i32) {
    %c0_i32 = arith.constant 0 : i32
    %c0_i32_0 = arith.constant 0 : i32
    %c0_i32_1 = arith.constant 0 : i32
    return %c0_i32, %c0_i32_0 : i32, i32
  }
  func.func @transform_3(%arg0: i32) -> (i32, i32) {
    %c0_i32 = arith.constant 0 : i32
    %c0_i32_0 = arith.constant 0 : i32
    return %arg0, %c0_i32 : i32, i32
  }
}

</mosaic_0001>

<bundles_post_ra>
// kernel: dino_feature_forward.12
= control target key start
LH: loop header
LB: loop body
LE: loop exit
PB: predicated region body
PF: predicated region fallthrough
CT: control target
= control target key end

     0   :  { %s890_s12 = smov 0   ;;  %s892_s13 = smov 0   ;;  %s996_s0 = inlined_call_operand.vmem [shape: bf16[32,768], index: 0, kind: input, shape index: {}]   ;;  %s997_s1 = inlined_call_operand.vmem [shape: bf16[768,32], index: 1, kind: input, shape index: {}]   ;;  %s998_s2 = inlined_call_operand.vmem [shape: f32[1,32], index: 2, kind: input, shape index: {}]   ;;  %s999_s3 = inlined_call_operand.vmem [shape: bf16[32,32], index: 3, kind: output, shape index: {}]  }
   0x1   :  { %s894_s14 = smov 0   ;;  %s896_s15 = smov 0  }
   0x2   :  { %s898_s16 = smov 0  }
   0x3 LB: > { %s25_s17 = sadd.s32 1, %s863_s15  ;;  %p48_p1 = scmp.ne.s32.totalorder %s855_s13, %s851_s12  ;;  %s867_s16 = sphi %s898_s16, %s13_s16   ;;  %s863_s15 = sphi %s896_s15, %s1003_s15   ;;  %s859_s14 = sphi %s894_s14, %s1002_s14   ;;  %s855_s13 = sphi %s892_s13, %s1001_s13   ;;  %s851_s12 = sphi %s890_s12, %s1000_s12  }
   0x4   : > { %p26_p0 = scmp.ge.s32.totalorder %s25_s17, 3  ;;  %p49_p2 = scmp.eq.s32.totalorder %s867_s16, 0 }
   0x5   : > { %s41_s19 = sadd.s32 1, %s855_s13  ;;  %p678_p5 = scmp.ge.s32.totalorder %s867_s16, 3 }
   0x6   : > { %s1005_s17 = smov (%p26_p0, %s25_s17), 0  ;;  %p50_p3 = por %p49_p2, %p48_p1 }
   0x7   : > { %s37_s18 = ssub.s32 %s863_s15, %s1005_s17  ;;  %162 = sbr.rel (%p678_p5) target bundleno = 21 (0x15), region = 20 }
   0x8   : > { %p39_p4 = scmp.eq.s32.totalorder %s37_s18, 0 }
   0xa   : > { %s925_s20 = scalar_select %p39_p4, %s855_s13, %s41_s19  }
   0xe   : > { %165 = sbr.rel (!%p50_p3) target bundleno = 21 (0x15), region = 24  ;;  %s167_s21 = sand.u32 (%p50_p3), 1, %s855_s13  }
   0xf   : > { %s717_s22 = sshll.u32 (%p50_p3), %s863_s15, 3  ;;  %s679_s23 = sshll.u32 (%p50_p3), %s167_s21, 5 }
  0x10   : > { %s175_s26 = scalar_lea.vmem (%p50_p3), %s996_s0, %s717_s22  ;;  %s169_s27 = scalar_lea.vmem (%p50_p3), [#allocation3], %s679_s23 }
  0x11   : > { %v209_v0 = vld [vmem:[%s175_s26] sm:$0xff] (%p50_p3)  ;;  %v211_v1 = vld [vmem:[%s175_s26 + $0x18] sm:$0xff] (%p50_p3)  ;;  %v213_v2 = vld [vmem:[%s175_s26 + $0x30] sm:$0xff] (%p50_p3) }
  0x12   : > { %210 = vst [vmem:[%s169_s27] sm:$0xff] (%p50_p3), %v209_v0  ;;  %212 = vst [vmem:[%s169_s27 + $0x8] sm:$0xff] (%p50_p3), %v211_v1  ;;  %v215_v3 = vld [vmem:[%s175_s26 + $0x48] sm:$0xff] (%p50_p3) }
  0x13   : > { %214 = vst [vmem:[%s169_s27 + $0x10] sm:$0xff] (%p50_p3), %v213_v2  ;;  %216 = vst [vmem:[%s169_s27 + $0x18] sm:$0xff] (%p50_p3), %v215_v3 }
  0x15 PF: > { %p682_p6 = scmp.ge.s32.totalorder %s867_s16, 1  ;;  %p233_p7 = scmp.lt.s32.totalorder %s867_s16, 4 }
  0x17   : > { %p234_p8 = pnand %p682_p6, %p233_p7 }
  0x18   : > { %s240_s28 = sand.u32 (!%p234_p8), 1, %s851_s12   ;;  %s684_s29 = sshll.u32 (!%p234_p8), %s859_s14, 5 }
  0x19   : > { %237 = sbr.rel (%p234_p8) target bundleno = 304 (0x130), region = 66  ;;  %s683_s30 = sshll.u32 (!%p234_p8), %s240_s28, 5 }
  0x1a   : > { %p280_p9 = scmp.lt.s32.totalorder (!%p234_p8), %s684_s29, 95  ;;  %s942_s8 = scalar_lea.vmem (!%p234_p8), [#allocation3], %s683_s30 }
  0x1b   : > { %p686_p10 = scmp.ne.s32.totalorder (!%p234_p8), %s859_s14, 0 }
  0x20   : > { %s1007_s29 = smov (!%p280_p9, %s684_s29), 95  ;;  %304 = sbr.rel (%p686_p10) target bundleno = 39 (0x27), region = 74 }
  0x21   : > { %s685_s4 = sshll.u32 %s1007_s29, 2  ;;  %vm305_vm0 = vcmask (!%p686_p10), 261120   ;;  %v869_v4 = vmov (!%p686_p10), 0.0  }
  0x22   : > { %s940_s7 = scalar_lea.vmem %s997_s1, %s685_s4  ;;  %306 = vst.msk [vmem:[#allocation2] sm:$0xff] (!%p686_p10), %vm305_vm0, %v869_v4  ;;  %307 = vst.msk [vmem:[#allocation2 + $0x8] sm:$0xff] (!%p686_p10), %vm305_vm0, %v869_v4 }
  0x23   : > { %308 = vst.msk [vmem:[#allocation2 + $0x10] sm:$0xff] (!%p686_p10), %vm305_vm0, %v869_v4  ;;  %309 = vst.msk [vmem:[#allocation2 + $0x18] sm:$0xff] (!%p686_p10), %vm305_vm0, %v869_v4 }
  0x27 PF: > { %v807_v5 = vld [vmem:[%s940_s7 + $0x40] sm:$0xff]   ;;  %v809_v7 = vld [vmem:[%s940_s7 + $0x48] sm:$0xff]   ;;  %v811_v9 = vld [vmem:[%s940_s7 + $0x50] sm:$0xff]   ;;  %vm519_vm1 = vcmask 261120   ;;  %p707_p11 = scmp.ne.s32.totalorder %s859_s14, 2 }
  0x28   : > { %v808_v6 = vld [vmem:[%s940_s7] sm:$0xff]   ;;  %722 = vmatprep.subr.bf16.mxu0 %v807_v5  ;;  %750 = vmatprep.subr.bf16.mxu1 %v807_v5  ;;  %v810_v8 = vld [vmem:[%s940_s7 + $0x8] sm:$0xff]   ;;  %v812_v10 = vld [vmem:[%s940_s7 + $0x10] sm:$0xff]   ;;  %vm559_vm2 = vcmask (!%p707_p11), 257024  }
  0x29   : > { %723 = vmatpush3.bf16.msra.mxu0 %v808_v6  ;;  %758 = vmatpush3.bf16.msra.mxu1 %v808_v6  ;;  %v813_v11 = vld [vmem:[%s940_s7 + $0x58] sm:$0xff]   ;;  %v815_v13 = vld [vmem:[%s940_s7 + $0x60] sm:$0xff]   ;;  %v817_v15 = vld [vmem:[%s940_s7 + $0x68] sm:$0xff]  }
  0x2a   : > { %724 = vmatprep.subr.bf16.mxu0 %v809_v7  ;;  %751 = vmatprep.subr.bf16.mxu1 %v809_v7  ;;  %v814_v12 = vld [vmem:[%s940_s7 + $0x18] sm:$0xff]   ;;  %v816_v14 = vld [vmem:[%s940_s7 + $0x20] sm:$0xff]   ;;  %v818_v18 = vld [vmem:[%s940_s7 + $0x28] sm:$0xff]  }
  0x2b   : > { %v825_v16 = vld [vmem:[%s942_s8 + $0x4] ss:$8 sps:$4 sm:$0xff]   ;;  %v828_v17 = vld [vmem:[%s942_s8 + $0x14] ss:$8 sps:$4 sm:$0xff]   ;;  %v823_v23 = vld [vmem:[%s942_s8] ss:$8 sps:$4 sm:$0xff]  }
  0x2c   : > { %v819_v19 = vld [vmem:[%s940_s7 + $0x70] sm:$0xff]   ;;  %498 = vmatprep.mubr.bf16.mxu0 %v825_v16  ;;  %506 = vmatprep.mubr.bf16.mxu1 %v828_v17  ;;  %v821_v21 = vld [vmem:[%s940_s7 + $0x78] sm:$0xff]   ;;  %v310_v27 = vld [vmem:[#allocation2] sm:$0xff] }
  0x2d   : > { %725 = vmatpush3.bf16.msra.mxu0 %v810_v8  ;;  %759 = vmatpush3.bf16.msra.mxu1 %v810_v8  ;;  %v820_v20 = vld [vmem:[%s940_s7 + $0x30] sm:$0xff]   ;;  %v822_v22 = vld [vmem:[%s940_s7 + $0x38] sm:$0xff]   ;;  %v311_v35 = vld [vmem:[#allocation2 + $0x8] sm:$0xff] }
  0x2e   : > { %726 = vmatprep.subr.bf16.mxu0 %v811_v9  ;;  %752 = vmatprep.subr.bf16.mxu1 %v811_v9  ;;  %v826_v24 = vld [vmem:[%s942_s8 + $0x10] ss:$8 sps:$4 sm:$0xff]   ;;  %v708_v46 = vld [vmem:[%s998_s2] ss:$0 sm:$0xff] (!%p707_p11) }
  0x2f   : > { %v312_v29 = vld [vmem:[#allocation2 + $0x10] sm:$0xff]  ;;  %v313_v37 = vld [vmem:[#allocation2 + $0x18] sm:$0xff] }
  0x31   : > { %727 = vmatpush3.bf16.msra.mxu0 %v812_v10  ;;  %760 = vmatpush3.bf16.msra.mxu1 %v812_v10 }
  0x32   : > { %728 = vmatprep.subr.bf16.mxu0 %v813_v11  ;;  %753 = vmatprep.subr.bf16.mxu1 %v813_v11 }
  0x35   : > { %729 = vmatpush3.bf16.msra.mxu0 %v814_v12  ;;  %761 = vmatpush3.bf16.msra.mxu1 %v814_v12 }
  0x36   : > { %730 = vmatprep.subr.bf16.mxu0 %v815_v13  ;;  %754 = vmatprep.subr.bf16.mxu1 %v815_v13 }
  0x39   : > { %731 = vmatpush3.bf16.msra.mxu0 %v816_v14  ;;  %762 = vmatpush3.bf16.msra.mxu1 %v816_v14 }
  0x3a   : > { %732 = vmatprep.subr.bf16.mxu0 %v817_v15  ;;  %755 = vmatprep.subr.bf16.mxu1 %v817_v15 }
  0x3d   : > { %733 = vmatpush3.bf16.msra.mxu0 %v818_v18  ;;  %763 = vmatpush3.bf16.msra.mxu1 %v818_v18 }
  0x3e   : > { %734 = vmatprep.subr.bf16.mxu0 %v819_v19  ;;  %756 = vmatprep.subr.bf16.mxu1 %v819_v19 }
  0x41   : > { %735 = vmatpush3.bf16.msra.mxu0 %v820_v20  ;;  %764 = vmatpush3.bf16.msra.mxu1 %v820_v20 }
  0x42   : > { %736 = vmatprep.subr.bf16.mxu0 %v821_v21  ;;  %757 = vmatprep.subr.bf16.mxu1 %v821_v21 }
  0x45   : > { %737 = vmatpush3.bf16.msra.mxu0 %v822_v22  ;;  %765 = vmatpush3.bf16.msra.mxu1 %v822_v22 }
  0x48   : > { %499 = vmatmul.mubr.bf16.vlgmr.msra.gmra.mrb[0].mxu0 %v823_v23  ;;  %507 = vmatmul.mubr.bf16.vlgmr.msra.gmra.mrb[0].mxu1 %v826_v24 }
 0x11b   : > { %v738_v25 = vpop.f32.mrb[0].mxu0  ;;  %v744_v26 = vpop.f32.mrb[0].mxu1 }
 0x11c   : > { %v739_v28 = vpop.f32.mrb[1].mxu0  ;;  %v745_v30 = vpop.f32.mrb[1].mxu1 }
 0x11d   : > { %v740_v31 = vadd.f32 %v739_v28, %v738_v25  ;;  %v746_v32 = vadd.f32 %v745_v30, %v744_v26  ;;  %v741_v33 = vpop.f32.mrb[2].mxu0  ;;  %v747_v34 = vpop.f32.mrb[2].mxu1  ;;  %527 = sbr.rel (%p707_p11) target bundleno = 304 (0x130), region = 78 }
 0x11e   : > { %v742_v36 = vpop.f32.mrb[3].mxu0  ;;  %v748_v38 = vpop.f32.mrb[3].mxu1 }
 0x11f   : > { %v515_v39 = vadd.f32 %v740_v31, %v310_v27  ;;  %v517_v40 = vadd.f32 %v746_v32, %v312_v29  ;;  %v743_v41 = vadd.f32 %v742_v36, %v741_v33  ;;  %v749_v42 = vadd.f32 %v748_v38, %v747_v34 }
 0x121   : > { %520 = vst.msk [vmem:[#allocation2] sm:$0xff] %vm519_vm1, %v515_v39  ;;  %522 = vst.msk [vmem:[#allocation2 + $0x10] sm:$0xff] %vm519_vm1, %v517_v40  ;;  %v516_v43 = vadd.f32 %v743_v41, %v311_v35  ;;  %v518_v44 = vadd.f32 %v749_v42, %v313_v37 }
 0x123   : > { %521 = vst.msk [vmem:[#allocation2 + $0x8] sm:$0xff] %vm519_vm1, %v516_v43  ;;  %523 = vst.msk [vmem:[#allocation2 + $0x18] sm:$0xff] %vm519_vm1, %v518_v44 }
 0x128   : > { %v528_v45 = vld [vmem:[#allocation2] sm:$0xff]  ;;  %v530_v50 = vld [vmem:[#allocation2 + $0x10] sm:$0xff] }
 0x129   : > { %v539_v48 = vadd.f32 %v708_v46, %v528_v45  ;;  %v541_v52 = vadd.f32 %v708_v46, %v530_v50 }
 0x12a   : > { %v529_v47 = vld [vmem:[#allocation2 + $0x8] sm:$0xff]  ;;  %v531_v51 = vld [vmem:[#allocation2 + $0x18] sm:$0xff] }
 0x12b   : > { %v540_v49 = vadd.f32 %v708_v46, %v529_v47  ;;  %v542_v53 = vadd.f32 %v708_v46, %v531_v51  ;;  %v718_v54 = vpack.c.bf16 %v539_v48, %v539_v48  ;;  %v720_v56 = vpack.c.bf16 %v541_v52, %v541_v52 }
 0x12d   : > { %v719_v55 = vpack.c.bf16 %v540_v49, %v540_v49  ;;  %v721_v57 = vpack.c.bf16 %v542_v53, %v542_v53  ;;  %560 = vst.msk [vmem:[%s999_s3] sm:$0xf] %vm559_vm2, %v718_v54  ;;  %562 = vst.msk [vmem:[%s999_s3 + $0x8] sm:$0xf] %vm559_vm2, %v720_v56 }
 0x12f   : > { %561 = vst.msk [vmem:[%s999_s3 + $0x4] sm:$0xf] %vm559_vm2, %v719_v55  ;;  %563 = vst.msk [vmem:[%s999_s3 + $0xc] sm:$0xf] %vm559_vm2, %v721_v57 }
 0x130 PF: > { %s13_s16 = sadd.s32 1, %s867_s16   ;;  %s1000_s12 = smov %s855_s13 }
 0x131   : > { %p10_p12 = scmp.ge.s32.totalorder %s13_s16, 5   ;;  %s1001_s13 = smov %s925_s20 }
 0x132   : > { %s1002_s14 = smov %s863_s15  ;;  %s1003_s15 = smov %s1005_s17 }
 0x133   :  { %12 = sbr.rel (!%p10_p12) target bundleno = 3 (0x3), region = 119 }

// kernel: dino_feature_forward.14
= control target key start
LH: loop header
LB: loop body
LE: loop exit
PB: predicated region body
PF: predicated region fallthrough
CT: control target
= control target key end

     0   :  { %s708_s6 = smov 0   ;;  %s792_s0 = inlined_call_operand.vmem [shape: bf16[2,17,96], index: 0, kind: input, shape index: {}]   ;;  %s793_s1 = inlined_call_operand.vmem [shape: bf16[2,17,32], index: 1, kind: output, shape index: {}]  }
   0x1 LB: > { %s559_s7 = sadd.s32 4294967295, %s689_s6   ;;  %p563_p0 = scmp.ge.s32.totalorder %s689_s6, 1  ;;  %s689_s6 = sphi %s708_s6, %s11_s6  }
   0x2   : > { %p87_p1 = scmp.lt.s32.totalorder %s689_s6, 3 }
   0x4   : > { %p88_p2 = pnand %p563_p0, %p87_p1 }
   0x5   : > { %p107_p3 = scmp.lt.s32.totalorder (!%p88_p2), %s559_s7, 1  ;;  %vm133_vm0 = vcmask (!%p88_p2), 130048   ;;  %s691_s12 = smov (!%p88_p2), 96   ;;  %vm204_vm1 = vcmask (!%p88_p2), 131072   ;;  %vm197_vm2 = vcmask (!%p88_p2), 138240   ;;  %vm245_vm3 = vcmask (!%p88_p2), 1040384  }
   0x6   : > { %91 = sbr.rel (%p88_p2) target bundleno = 1582 (0x62e), region = 24  ;;  %s692_s13 = smov (!%p88_p2), 64   ;;  %v695_v35 = vmov (!%p88_p2), 0   ;;  %vm498_vm4 = vcmask (!%p88_p2), 253952   ;;  %vm499_vm5 = vsmask.f32 (!%p88_p2), 256 }
   0x7   : > { %s693_s14 = smov (!%p88_p2), 80   ;;  %s694_s15 = smov (!%p88_p2), 112   ;;  %v750_v36 = vsel (!%p88_p2), %vm245_vm3, 65535, %v695_v35  ;;  %vm495_vm6 = vcmask (!%p88_p2), 257024   ;;  %vm500_vm7 = vmand (!%p88_p2), %vm498_vm4, %vm499_vm5 }
   0x8   : > { %s696_s16 = smov (!%p88_p2), 48   ;;  %s697_s17 = smov (!%p88_p2), 16  }
   0xd   : > { %s795_s7 = smov (!%p107_p3, %s559_s7), 1 }
   0xe   : > { %s636_s8 = smul.u32 12, %s795_s7 }
  0x10   : > { %s111_s11 = scalar_lea.vmem %s792_s0, %s636_s8  ;;  %s116_s20 = scalar_lea.vmem %s793_s1, %s636_s8 }
  0x11   : > { %v724_v0 = vld [vmem:[%s111_s11] sm:$0xff]   ;;  %v727_v1 = vld [vmem:[%s111_s11 + $0x8] ss:$0 sps:$4 sm:$0x11]  }
  0x12   : > { %129 = vrot.lane.b32.xlu0 %v724_v0, %s691_s12  ;;  %604 = vmatprep.mubr.msk.bf16.mxu0 %vm133_vm0, %v724_v0 }
  0x16   : > { %131 = vrot.lane.b32.xlu0 %v727_v1, %s691_s12 }
  0x84   : > { %v130_v2 = vpop.permute.xlu0 %129 }
  0x85   : > { %632 = vmatprep.subr.msk.bf16.mxu0 %vm133_vm0, %v130_v2  ;;  %v141_v3 = vsel %vm133_vm0, %v130_v2, 0 }
  0x86   : > { %601 = vmatpush3.bf16.xpose.msra.mxu0 %v141_v3 }
  0x88   : > { %v132_v4 = vpop.permute.xlu0 %131 }
  0x89   : > { %633 = vmatprep.subr.msk.bf16.mxu0 %vm133_vm0, %v132_v4  ;;  %v144_v5 = vsel %vm133_vm0, %v132_v4, 0 }
  0x8e   : > { %603 = vmatpush3.bf16.xpose.msra.mxu0 %v144_v5 }
  0x95   : > { %605 = vmatmul.mubr.msk.bf16.vlgmr.msra.gmra.mrb[0].mxu0 %vm133_vm0, %v727_v1 }
 0x168   : > { %v606_v6 = vpop.f32.mrb[0].mxu0 }
 0x169   : > { %v196_v7 = vmul.f32 0.25, %v606_v6  ;;  %v180_v8 = vpop.f32.mrb[1].mxu0 }
 0x16a   : > { %v194_v9 = vmul.f32 0.25, %v180_v8  ;;  %v607_v10 = vpop.f32.mrb[2].mxu0 }
 0x16b   : > { %v183_v11 = vpop.f32.mrb[3].mxu0  ;;  %v205_v12 = vsel %vm204_vm1, %v196_v7, -inf }
 0x16c   : > { %v195_v13 = vmul.f32 0.25, %v183_v11  ;;  %206 = vmax.xlane.f32.xlu0 %v205_v12  ;;  %v198_v14 = vsel %vm197_vm2, %v194_v9, -inf }
 0x16d   : > { %199 = vmax.xlane.f32.xlu1 %v198_v14 }
 0x16e   : > { %v201_v15 = vsel %vm197_vm2, %v195_v13, -inf }
 0x171   : > { %202 = vmax.xlane.f32.xlu1 %v201_v15 }
 0x182   : > { %234 = vrot.lane.b32.xlu1 %v724_v0, %s692_s13  ;;  %303 = vrot.lane.b32.xlu0 %v724_v0, %s693_s14 }
 0x1f9   : > { %v207_v16 = vpop.xlane.xlu0 %206 }
 0x1fa   : > { %v210_v17 = vsub.f32 %v196_v7, %v207_v16  ;;  %v200_v18 = vpop.xlane.xlu1 %199 }
 0x1fb   : > { %v208_v19 = vsub.f32 %v194_v9, %v200_v18 }
 0x1fc   : > { %v215_v20 = vmul.f32 1.442695, %v210_v17 }
 0x1fd   : > { %v211_v21 = vmul.f32 1.442695, %v208_v19  ;;  %v304_v39 = vpop.permute.xlu0 %303 }
 0x1fe   : > { %659 = vpow2.f32 %v215_v20  ;;  %v203_v22 = vpop.xlane.xlu1 %202  ;;  %v314_v48 = vsel %vm133_vm0, %v304_v39, 0 }
 0x1ff   : > { %v209_v23 = vsub.f32 %v195_v13, %v203_v22  ;;  %661 = vpow2.f32 %v211_v21 }
 0x201   : > { %v213_v24 = vmul.f32 1.442695, %v209_v23 }
 0x202   : > { %v235_v25 = vpop.permute.xlu1 %234 }
 0x203   : > { %608 = vmatprep.subr.bf16.mxu1 %v235_v25  ;;  %663 = vpow2.f32 %v213_v24 }
 0x204   : > { %609 = vmatpush3.bf16.msra.mxu1 %v235_v25 }
 0x208   : > { %v660_v26 = vpop.eup %659 }
 0x209   : > { %v223_v27 = vsel %vm204_vm1, %v660_v26, 0.0  ;;  %v662_v28 = vpop.eup %661 }
 0x20a   : > { %224 = vadd.xlane.f32.xlu1 %v223_v27  ;;  %v217_v29 = vsel %vm197_vm2, %v662_v28, 0.0 }
 0x20d   : > { %v664_v30 = vpop.eup %663 }
 0x20e   : > { %218 = vadd.xlane.f32.xlu1 %v217_v29  ;;  %v220_v31 = vsel %vm197_vm2, %v664_v30, 0.0 }
 0x212   : > { %221 = vadd.xlane.f32.xlu1 %v220_v31 }
 0x223   : > { %236 = vrot.lane.b32.xlu1 %v727_v1, %s692_s13 }
 0x227   : > { %305 = vrot.lane.b32.xlu1 %v727_v1, %s693_s14 }
 0x22b   : > { %299 = vrot.lane.b32.xlu1 %v724_v0, %s694_s15 }
 0x22f   : > { %301 = vrot.lane.b32.xlu1 %v727_v1, %s694_s15 }
 0x297   : > { %v225_v32 = vpop.xlane.xlu1 %224 }
 0x298   : > { %665 = vrcp.f32 %v225_v32 }
 0x29b   : > { %v219_v33 = vpop.xlane.xlu1 %218 }
 0x29c   : > { %667 = vrcp.f32 %v219_v33 }
 0x29f   : > { %v222_v34 = vpop.xlane.xlu1 %221 }
 0x2a0   : > { %669 = vrcp.f32 %v222_v34 }
 0x2a2   : > { %v666_v40 = vpop.eup %665 }
 0x2a3   : > { %v237_v37 = vpop.permute.xlu1 %236  ;;  %v231_v44 = vmul.f32 %v666_v40, %v660_v26 }
 0x2a4   : > { %v249_v38 = vand.u32 %v750_v36, %v237_v37 }
 0x2a5   : > { %v233_v49 = vpack.c.bf16 %v231_v44, %v231_v44 }
 0x2a6   : > { %610 = vmatprep.subr.bf16.mxu1 %v249_v38  ;;  %v668_v41 = vpop.eup %667 }
 0x2a7   : > { %611 = vmatpush3.bf16.msra.mxu1 %v249_v38  ;;  %v306_v42 = vpop.permute.xlu1 %305  ;;  %v229_v45 = vmul.f32 %v668_v41, %v662_v28 }
 0x2a8   : > { %634 = vmatprep.subr.msk.bf16.mxu1 %vm133_vm0, %v304_v39  ;;  %v317_v51 = vsel %vm133_vm0, %v306_v42, 0 }
 0x2aa   : > { %v670_v43 = vpop.eup %669 }
 0x2ab   : > { %v230_v46 = vmul.f32 %v670_v43, %v664_v30  ;;  %v300_v50 = vpop.permute.xlu1 %299 }
 0x2ad   : > { %v232_v47 = vpack.c.bf16 %v230_v46, %v229_v45 }
 0x2af   : > { %612 = vmatprep.mubr.msk.bf16.mxu1 %vm197_vm2, %v232_v47  ;;  %v302_v52 = vpop.permute.xlu1 %301 }
 0x2b0   : > { %613 = vmatmul.mubr.msk.bf16.vlgmr.msra.gmra.mrb[0].mxu1 %vm197_vm2, %v233_v49 }
 0x2b1   : > { %617 = vmatpush3.bf16.xpose.msra.mxu1 %v314_v48  ;;  %620 = vmatprep.mubr.msk.bf16.mxu1 %vm133_vm0, %v300_v50 }
 0x2b2   : > { %635 = vmatprep.subr.msk.bf16.mxu1 %vm133_vm0, %v306_v42  ;;  %v501_v42 = vld [vmem:[%s116_s20 + $0x8] sm:$0x1] }
 0x2b9   : > { %619 = vmatpush3.bf16.xpose.msra.mxu1 %v317_v51 }
 0x2c0   : > { %621 = vmatmul.mubr.msk.bf16.vlgmr.msra.gmra.mrb[4].mxu1 %vm133_vm0, %v302_v52 }
 0x383   : > { %v761_v53 = vpop.f32.mrb[0].mxu1 }
 0x384   : > { %v763_v54 = vpop.f32.mrb[1].mxu1 }
 0x385   : > { %v615_v55 = vpop.f32.mrb[2].mxu1 }
 0x386   : > { %v765_v56 = vpop.f32.mrb[3].mxu1 }
 0x393   : > { %v622_v57 = vpop.f32.mrb[4].mxu1 }
 0x394   : > { %v353_v58 = vpop.f32.mrb[5].mxu1  ;;  %v369_v62 = vmul.f32 0.25, %v622_v57 }
 0x395   : > { %v367_v59 = vmul.f32 0.25, %v353_v58  ;;  %v623_v60 = vpop.f32.mrb[6].mxu1 }
 0x396   : > { %v356_v61 = vpop.f32.mrb[7].mxu1  ;;  %v376_v4 = vsel %vm204_vm1, %v369_v62, -inf }
 0x397   : > { %v368_v63 = vmul.f32 0.25, %v356_v61  ;;  %v370_v2 = vsel %vm197_vm2, %v367_v59, -inf }
 0x398   : > { %371 = vmax.xlane.f32.xlu1 %v370_v2 }
 0x399   : > { %v373_v3 = vsel %vm197_vm2, %v368_v63, -inf }
 0x39a   : > { %374 = vmax.xlane.f32.xlu0 %v373_v3 }
 0x39c   : > { %377 = vmax.xlane.f32.xlu1 %v376_v4 }
 0x425   : > { %v372_v5 = vpop.xlane.xlu1 %371 }
 0x426   : > { %v379_v7 = vsub.f32 %v367_v59, %v372_v5 }
 0x427   : > { %v375_v6 = vpop.xlane.xlu0 %374 }
 0x428   : > { %v380_v8 = vsub.f32 %v368_v63, %v375_v6  ;;  %v382_v12 = vmul.f32 1.442695, %v379_v7 }
 0x429   : > { %v378_v9 = vpop.xlane.xlu1 %377 }
 0x42a   : > { %v384_v10 = vmul.f32 1.442695, %v380_v8  ;;  %v381_v11 = vsub.f32 %v369_v62, %v378_v9 }
 0x42c   : > { %671 = vpow2.f32 %v384_v10  ;;  %v386_v13 = vmul.f32 1.442695, %v381_v11 }
 0x42e   : > { %673 = vpow2.f32 %v386_v13 }
 0x42f   : > { %675 = vpow2.f32 %v382_v12 }
 0x436   : > { %v672_v14 = vpop.eup %671 }
 0x437   : > { %v391_v15 = vsel %vm197_vm2, %v672_v14, 0.0 }
 0x438   : > { %v674_v16 = vpop.eup %673  ;;  %392 = vadd.xlane.f32.xlu1 %v391_v15 }
 0x439   : > { %v394_v17 = vsel %vm204_vm1, %v674_v16, 0.0  ;;  %v676_v18 = vpop.eup %675 }
 0x43a   : > { %395 = vadd.xlane.f32.xlu0 %v394_v17  ;;  %v388_v19 = vsel %vm197_vm2, %v676_v18, 0.0 }
 0x43e   : > { %389 = vadd.xlane.f32.xlu0 %v388_v19 }
 0x449   : > { %405 = vrot.lane.b32.xlu1 %v724_v0, %s696_s16 }
 0x454   : > { %407 = vrot.lane.b32.xlu0 %v727_v1, %s696_s16 }
 0x4c5   : > { %v393_v20 = vpop.xlane.xlu1 %392 }
 0x4c7   : > { %v396_v21 = vpop.xlane.xlu0 %395 }
 0x4c8   : > { %677 = vrcp.f32 %v396_v21 }
 0x4c9   : > { %v406_v22 = vpop.permute.xlu1 %405  ;;  %679 = vrcp.f32 %v393_v20 }
 0x4ca   : > { %624 = vmatprep.subr.bf16.mxu0 %v406_v22 }
 0x4cb   : > { %v390_v23 = vpop.xlane.xlu0 %389  ;;  %625 = vmatpush3.bf16.msra.mxu0 %v406_v22 }
 0x4cc   : > { %681 = vrcp.f32 %v390_v23 }
 0x4cf   : > { %v408_v24 = vpop.permute.xlu0 %407 }
 0x4d0   : > { %v417_v25 = vand.u32 %v408_v24, %v750_v36 }
 0x4d2   : > { %626 = vmatprep.subr.bf16.mxu0 %v417_v25  ;;  %v678_v26 = vpop.eup %677 }
 0x4d3   : > { %627 = vmatpush3.bf16.msra.mxu0 %v417_v25  ;;  %v680_v27 = vpop.eup %679  ;;  %v402_v0 = vmul.f32 %v678_v26, %v674_v16 }
 0x4d4   : > { %v401_v29 = vmul.f32 %v680_v27, %v672_v14 }
 0x4d5   : > { %v404_v31 = vpack.c.bf16 %v402_v0, %v402_v0 }
 0x4d6   : > { %v682_v28 = vpop.eup %681 }
 0x4d7   : > { %v400_v1 = vmul.f32 %v682_v28, %v676_v18 }
 0x4d9   : > { %v403_v30 = vpack.c.bf16 %v401_v29, %v400_v1 }
 0x4db   : > { %628 = vmatprep.mubr.msk.bf16.mxu0 %vm197_vm2, %v403_v30 }
 0x4dc   : > { %629 = vmatmul.mubr.msk.bf16.vlgmr.msra.gmra.mrb[4].mxu0 %vm197_vm2, %v404_v31 }
 0x5af   : > { %v630_v32 = vpop.f32.mrb[4].mxu0 }
 0x5b0   : > { %v453_v33 = vpop.f32.mrb[5].mxu0 }
 0x5b1   : > { %v652_v34 = vpack.i.bf16 %v453_v33, %v630_v32  ;;  %v631_v35 = vpop.f32.mrb[6].mxu0 }
 0x5b2   : > { %v456_v36 = vpop.f32.mrb[7].mxu0 }
 0x5b3   : > { %653 = vrot.lane.b32.xlu1 %v652_v34, %s697_s17 }
 0x5b7   : > { %472 = vrot.lane.b32.xlu1 %v456_v36, %s697_s17 }
 0x625   : > { %v654_v37 = vpop.permute.xlu1 %653 }
 0x626   : > { %v656_v38 = vunpack.i.h.bf16 %v654_v37  ;;  %v655_v39 = vunpack.i.l.bf16 %v654_v37 }
 0x628   : > { %v479_v40 = vsel %vm133_vm0, %v763_v54, %v656_v38  ;;  %v481_v41 = vsel %vm133_vm0, %v761_v53, %v655_v39 }
 0x629   : > { %v581_v43 = vpack.c.bf16 %v479_v40, %v479_v40  ;;  %v583_v44 = vpack.c.bf16 %v481_v41, %v481_v41  ;;  %v473_v45 = vpop.permute.xlu1 %472 }
 0x62a   : > { %v480_v46 = vsel %vm133_vm0, %v765_v56, %v473_v45 }
 0x62b   : > { %496 = vst.msk [vmem:[%s116_s20] sm:$0xf] %vm495_vm6, %v581_v43  ;;  %v502_v47 = vsel %vm500_vm7, %v583_v44, %v501_v42  ;;  %v582_v48 = vpack.c.bf16 %v480_v46, %v480_v46 }
 0x62c   : > { %503 = vst [vmem:[%s116_s20 + $0x8] sm:$0x1] %v502_v47 }
 0x62d   : > { %497 = vst.msk [vmem:[%s116_s20 + $0x4] sm:$0xf] %vm495_vm6, %v582_v48 }
 0x62e PF: > { %s11_s6 = sadd.s32 1, %s689_s6  }
 0x62f   : > { %p8_p4 = scmp.ge.s32.totalorder %s11_s6, 4  }
 0x631   :  { %10 = sbr.rel (!%p8_p4) target bundleno = 1 (0x1), region = 54 }

// kernel: dino_feature_forward.13
= control target key start
LH: loop header
LB: loop body
LE: loop exit
PB: predicated region body
PF: predicated region fallthrough
CT: control target
= control target key end

     0   :  { %vm31_vm0 = vcmask 261120   ;;  %vm44_vm1 = vcmask 254976   ;;  %v312_v39 = vmov 0.0   ;;  %vm313_vm2 = vmmov 0   ;;  %s418_s0 = inlined_call_operand.vmem [shape: bf16[34,32], index: 0, kind: input, shape index: {}]   ;;  %s419_s3 = inlined_call_operand.vmem [shape: bf16[32,96], index: 3, kind: input, shape index: {}]   ;;  %s420_s1 = inlined_call_operand.vmem [shape: f32[1,32], index: 1, kind: input, shape index: {}]   ;;  %s421_s2 = inlined_call_operand.vmem [shape: f32[1,32], index: 2, kind: input, shape index: {}]   ;;  %s422_s4 = inlined_call_operand.vmem [shape: f32[1,96], index: 4, kind: input, shape index: {}]   ;;  %s423_s5 = inlined_call_operand.vmem [shape: bf16[34,96], index: 5, kind: output, shape index: {}]  }
   0x1   :  { %v272_v0 = vld [vmem:[%s418_s0 + $0x8] sm:$0xff]   ;;  %v265_v1 = vld [vmem:[%s418_s0] sm:$0xff]   ;;  %v25_v5 = vld [vmem:[%s418_s0 + $0x10] sm:$0x1]  ;;  %294 = vmatprep.subr.bf16.mxu1 %v312_v39  ;;  %278 = vmatprep.subr.bf16.mxu0 %v312_v39  ;;  %vm235_vm3 = vcmask 781312   ;;  %vm240_vm4 = vcmask 778240  }
   0x2   :  { %v270_v2 = vunpack.c.l.bf16 %v272_v0  ;;  %v271_v3 = vunpack.c.h.bf16 %v272_v0  ;;  %v266_v4 = vunpack.c.l.bf16 %v265_v1  ;;  %v267_v6 = vunpack.c.h.bf16 %v265_v1  ;;  %v300_v38 = vld [vmem:[%s419_s3] sm:$0xff]   ;;  %v301_v40 = vld [vmem:[%s419_s3 + $0x8] sm:$0xff]   ;;  %286 = vmatprep.mubr.msk.bf16.mxu1 %vm313_vm2, %v312_v39  ;;  %282 = vmatprep.mubr.msk.bf16.mxu0 %vm313_vm2, %v312_v39 }
   0x3   :  { %v30_v10 = vunpack.c.l.bf16 %v25_v5  ;;  %296 = vmatpush3.bf16.msra.mxu1 %v300_v38  ;;  %279 = vmatpush3.bf16.msra.mxu0 %v300_v38  ;;  %v246_v58 = vld [vmem:[%s420_s1] ss:$0 sm:$0xff] }
   0x4   :  { %v38_v7 = vsel %vm31_vm0, %v270_v2, 0.0  ;;  %v32_v8 = vsel %vm31_vm0, %v266_v4, 0.0  ;;  %v41_v9 = vsel %vm31_vm0, %v271_v3, 0.0  ;;  %v35_v11 = vsel %vm31_vm0, %v267_v6, 0.0  ;;  %295 = vmatprep.subr.bf16.mxu1 %v312_v39  ;;  %280 = vmatprep.subr.bf16.mxu0 %v312_v39  ;;  %v247_v0 = vld [vmem:[%s421_s2] ss:$0 sm:$0xff] }
   0x5   :  { %39 = vadd.xlane.f32.xlu0 %v38_v7  ;;  %33 = vadd.xlane.f32.xlu1 %v32_v8  ;;  %v45_v12 = vsel %vm44_vm1, %v30_v10, 0.0 }
   0x7   :  { %297 = vmatpush3.bf16.msra.mxu1 %v301_v40  ;;  %281 = vmatpush3.bf16.msra.mxu0 %v301_v40 }
   0x9   :  { %42 = vadd.xlane.f32.xlu0 %v41_v9  ;;  %36 = vadd.xlane.f32.xlu1 %v35_v11 }
   0xd   :  { %46 = vadd.xlane.f32.xlu0 %v45_v12 }
  0x92   :  { %v40_v13 = vpop.xlane.xlu0 %39  ;;  %v34_v14 = vpop.xlane.xlu1 %33 }
  0x93   :  { %v51_v15 = vmul.f32 0.03125, %v40_v13  ;;  %v49_v16 = vmul.f32 0.03125, %v34_v14 }
  0x95   :  { %v358_v17 = vsub.f32 %v270_v2, %v51_v15  ;;  %v360_v18 = vsub.f32 %v266_v4, %v49_v16 }
  0x96   :  { %v43_v19 = vpop.xlane.xlu0 %42  ;;  %v37_v20 = vpop.xlane.xlu1 %36 }
  0x97   :  { %v52_v21 = vmul.f32 0.03125, %v43_v19  ;;  %v61_v22 = vmul.f32 %v358_v17, %v358_v17  ;;  %v50_v23 = vmul.f32 0.03125, %v37_v20  ;;  %v59_v24 = vmul.f32 %v360_v18, %v360_v18 }
  0x99   :  { %v57_v25 = vsub.f32 %v271_v3, %v52_v21  ;;  %v70_v26 = vsel %vm31_vm0, %v61_v22, 0.0  ;;  %v367_v27 = vsub.f32 %v267_v6, %v50_v23  ;;  %v64_v31 = vsel %vm31_vm0, %v59_v24, 0.0 }
  0x9a   :  { %v47_v28 = vpop.xlane.xlu0 %46  ;;  %71 = vadd.xlane.f32.xlu1 %v70_v26 }
  0x9b   :  { %v53_v29 = vmul.f32 0.03125, %v47_v28  ;;  %v62_v30 = vmul.f32 %v57_v25, %v57_v25  ;;  %v60_v32 = vmul.f32 %v367_v27, %v367_v27 }
  0x9d   :  { %v58_v33 = vsub.f32 %v30_v10, %v53_v29  ;;  %v73_v34 = vsel %vm31_vm0, %v62_v30, 0.0  ;;  %v67_v36 = vsel %vm31_vm0, %v60_v32, 0.0 }
  0x9e   :  { %74 = vadd.xlane.f32.xlu0 %v73_v34  ;;  %65 = vadd.xlane.f32.xlu1 %v64_v31 }
  0x9f   :  { %v63_v35 = vmul.f32 %v58_v33, %v58_v33 }
  0xa1   :  { %v76_v37 = vsel %vm44_vm1, %v63_v35, 0.0 }
  0xa2   :  { %77 = vadd.xlane.f32.xlu1 %v76_v37  ;;  %68 = vadd.xlane.f32.xlu0 %v67_v36 }
 0x127   :  { %v72_v41 = vpop.xlane.xlu1 %71 }
 0x128   :  { %v81_v42 = vmul.f32 0.03125, %v72_v41 }
 0x12a   :  { %v86_v43 = vadd.f32 1e-06, %v81_v42 }
 0x12b   :  { %v75_v44 = vpop.xlane.xlu0 %74  ;;  %v66_v45 = vpop.xlane.xlu1 %65 }
 0x12c   :  { %302 = vrsqrt.f32 %v86_v43  ;;  %v82_v46 = vmul.f32 0.03125, %v75_v44  ;;  %v79_v47 = vmul.f32 0.03125, %v66_v45 }
 0x12e   :  { %v87_v48 = vadd.f32 1e-06, %v82_v46  ;;  %v84_v49 = vadd.f32 1e-06, %v79_v47 }
 0x12f   :  { %v69_v50 = vpop.xlane.xlu0 %68  ;;  %v78_v51 = vpop.xlane.xlu1 %77 }
 0x130   :  { %304 = vrsqrt.f32 %v87_v48  ;;  %v80_v52 = vmul.f32 0.03125, %v69_v50  ;;  %v83_v53 = vmul.f32 0.03125, %v78_v51 }
 0x131   :  { %306 = vrsqrt.f32 %v84_v49 }
 0x132   :  { %v85_v54 = vadd.f32 1e-06, %v80_v52  ;;  %v88_v55 = vadd.f32 1e-06, %v83_v53 }
 0x134   :  { %308 = vrsqrt.f32 %v85_v54 }
 0x135   :  { %310 = vrsqrt.f32 %v88_v55 }
 0x136   :  { %v303_v56 = vpop.eup %302 }
 0x137   :  { %v96_v57 = vmul.f32 %v303_v56, %v358_v17  ;;  %v248_v17 = vld [vmem:[%s422_s4] ss:$0 sm:$0xff] }
 0x139   :  { %v108_v62 = vmul.f32 %v246_v58, %v96_v57 }
 0x13a   :  { %v305_v59 = vpop.eup %304 }
 0x13b   :  { %v307_v60 = vpop.eup %306  ;;  %v97_v61 = vmul.f32 %v305_v59, %v57_v25  ;;  %v120_v5 = vadd.f32 %v247_v0, %v108_v62 }
 0x13c   :  { %v94_v63 = vmul.f32 %v307_v60, %v360_v18 }
 0x13d   :  { %v109_v1 = vmul.f32 %v246_v58, %v97_v61 }
 0x13e   :  { %v309_v2 = vpop.eup %308  ;;  %v106_v7 = vmul.f32 %v246_v58, %v94_v63 }
 0x13f   :  { %v311_v3 = vpop.eup %310  ;;  %v95_v4 = vmul.f32 %v309_v2, %v367_v27  ;;  %v121_v6 = vadd.f32 %v247_v0, %v109_v1 }
 0x140   :  { %v98_v8 = vmul.f32 %v311_v3, %v58_v33  ;;  %v118_v12 = vadd.f32 %v247_v0, %v106_v7 }
 0x141   :  { %v124_v9 = vpack.c.bf16 %v121_v6, %v120_v5  ;;  %v107_v10 = vmul.f32 %v246_v58, %v95_v4 }
 0x142   :  { %v110_v11 = vmul.f32 %v246_v58, %v98_v8 }
 0x143   :  { %287 = vmatmul.mubr.msk.bf16.vlgmr.msra.gmra.mrb[0].mxu1 %vm31_vm0, %v124_v9  ;;  %v119_v13 = vadd.f32 %v247_v0, %v107_v10 }
 0x144   :  { %290 = vmatprep.mubr.msk.bf16.mxu1 %vm313_vm2, %v312_v39  ;;  %v122_v15 = vadd.f32 %v247_v0, %v110_v11 }
 0x145   :  { %v123_v14 = vpack.c.bf16 %v119_v13, %v118_v12 }
 0x146   :  { %v125_v16 = vpack.c.bf16 %v122_v15, %v122_v15 }
 0x147   :  { %283 = vmatmul.mubr.msk.bf16.vlgmr.msra.gmra.mrb[0].mxu0 %vm31_vm0, %v123_v14 }
 0x14b   :  { %291 = vmatmul.mubr.msk.bf16.gmra.mrb[4].mxu1 %vm31_vm0, %v125_v16 }
 0x216   :  { %v200_v18 = vpop.f32.mrb[0].mxu1 }
 0x217   :  { %v201_v19 = vadd.f32 %v248_v17, %v200_v18  ;;  %v288_v20 = vpop.f32.mrb[1].mxu1 }
 0x218   :  { %v203_v21 = vpop.f32.mrb[2].mxu1 }
 0x219   :  { %v261_v22 = vpack.c.bf16 %v201_v19, %v201_v19  ;;  %v204_v23 = vadd.f32 %v248_v17, %v203_v21  ;;  %v289_v24 = vpop.f32.mrb[3].mxu1 }
 0x21a   :  { %v192_v25 = vpop.f32.mrb[0].mxu0 }
 0x21b   :  { %238 = vst.msk [vmem:[%s423_s5 + $0x8] sm:$0xf] %vm235_vm3, %v261_v22  ;;  %v262_v26 = vpack.c.bf16 %v204_v23, %v204_v23  ;;  %v193_v27 = vadd.f32 %v248_v17, %v192_v25  ;;  %v284_v28 = vpop.f32.mrb[1].mxu0 }
 0x21c   :  { %v195_v29 = vpop.f32.mrb[2].mxu0 }
 0x21d   :  { %239 = vst.msk [vmem:[%s423_s5 + $0xc] sm:$0xf] %vm235_vm3, %v262_v26  ;;  %v259_v30 = vpack.c.bf16 %v193_v27, %v193_v27  ;;  %v196_v31 = vadd.f32 %v248_v17, %v195_v29  ;;  %v285_v32 = vpop.f32.mrb[3].mxu0 }
 0x21e   :  { %v208_v33 = vpop.f32.mrb[4].mxu1 }
 0x21f   :  { %236 = vst.msk [vmem:[%s423_s5] sm:$0xf] %vm235_vm3, %v259_v30  ;;  %v260_v34 = vpack.c.bf16 %v196_v31, %v196_v31  ;;  %v209_v35 = vadd.f32 %v248_v17, %v208_v33  ;;  %v292_v36 = vpop.f32.mrb[5].mxu1 }
 0x220   :  { %v211_v37 = vpop.f32.mrb[6].mxu1 }
 0x221   :  { %237 = vst.msk [vmem:[%s423_s5 + $0x4] sm:$0xf] %vm235_vm3, %v260_v34  ;;  %v263_v38 = vpack.c.bf16 %v209_v35, %v209_v35  ;;  %v293_v39 = vpop.f32.mrb[7].mxu1 }
 0x223   :  { %241 = vst.msk [vmem:[%s423_s5 + $0x10] sm:$0x1] %vm240_vm4, %v263_v38 }

// kernel: dino_feature_forward.15
= control target key start
LH: loop header
LB: loop body
LE: loop exit
PB: predicated region body
PF: predicated region fallthrough
CT: control target
= control target key end

     0   :  { %vm22_vm0 = vcmask 261120   ;;  %v272_v0 = vmov 0.0   ;;  %vm273_vm1 = vmmov 0   ;;  %vm27_vm2 = vcmask 254976   ;;  %s354_s1 = inlined_call_operand.vmem [shape: bf16[32,32], index: 1, kind: input, shape index: {}]   ;;  %s355_s0 = inlined_call_operand.vmem [shape: bf16[34,32], index: 0, kind: input, shape index: {}]   ;;  %s356_s3 = inlined_call_operand.vmem [shape: bf16[34,32], index: 3, kind: input, shape index: {}]   ;;  %s357_s2 = inlined_call_operand.vmem [shape: f32[1,32], index: 2, kind: input, shape index: {}]   ;;  %s358_s4 = inlined_call_operand.vmem [shape: bf16[34,32], index: 4, kind: output, shape index: {}]  }
   0x1   :  { %261 = vmatprep.subr.bf16.mxu1 %v272_v0  ;;  %v267_v1 = vld [vmem:[%s354_s1] sm:$0xff]   ;;  %245 = vmatprep.subr.bf16.mxu0 %v272_v0  ;;  %23 = vst.msk [vmem:[#allocation2] sm:$0xff] %vm22_vm0, %v272_v0  ;;  %24 = vst.msk [vmem:[#allocation2 + $0x8] sm:$0xff] %vm22_vm0, %v272_v0  ;;  %v268_v2 = vld [vmem:[%s354_s1 + $0x8] sm:$0xff]   ;;  %vm201_vm3 = vcmask 257024   ;;  %vm206_vm4 = vcmask 253952  }
   0x2   :  { %25 = vst.msk [vmem:[#allocation2 + $0x10] sm:$0xff] %vm22_vm0, %v272_v0  ;;  %26 = vst.msk [vmem:[#allocation2 + $0x18] sm:$0xff] %vm22_vm0, %v272_v0  ;;  %253 = vmatprep.mubr.msk.bf16.mxu1 %vm273_vm1, %v272_v0  ;;  %249 = vmatprep.mubr.msk.bf16.mxu0 %vm273_vm1, %v272_v0  ;;  %v269_v3 = vld [vmem:[%s355_s0 + $0x8] sm:$0xff]   ;;  %v270_v4 = vld [vmem:[%s355_s0] sm:$0xff]  }
   0x3   :  { %263 = vmatpush3.bf16.msra.mxu1 %v267_v1  ;;  %246 = vmatpush3.bf16.msra.mxu0 %v267_v1  ;;  %v271_v5 = vld [vmem:[%s355_s0 + $0x10] ss:$0 sps:$4 sm:$0x11]   ;;  %28 = vst.msk [vmem:[#allocation2 + $0x20] sm:$0x3] %vm27_vm2, %v272_v0  ;;  %v239_v22 = vld [vmem:[%s356_s3 + $0x8] sm:$0xff]  }
   0x4   :  { %262 = vmatprep.subr.bf16.mxu1 %v272_v0  ;;  %247 = vmatprep.subr.bf16.mxu0 %v272_v0  ;;  %v232_v23 = vld [vmem:[%s356_s3] sm:$0xff]   ;;  %v237_v27 = vunpack.c.l.bf16 %v239_v22  ;;  %v238_v35 = vunpack.c.h.bf16 %v239_v22  ;;  %v169_v45 = vld [vmem:[%s356_s3 + $0x10] sm:$0x1] }
   0x5   :  { %v220_v25 = vld [vmem:[%s357_s2] ss:$0 sm:$0xff]  ;;  %v233_v28 = vunpack.c.l.bf16 %v232_v23  ;;  %v234_v37 = vunpack.c.h.bf16 %v232_v23  ;;  %v174_v52 = vunpack.c.l.bf16 %v169_v45 }
   0x7   :  { %264 = vmatpush3.bf16.msra.mxu1 %v268_v2  ;;  %248 = vmatpush3.bf16.msra.mxu0 %v268_v2 }
   0x8   :  { %v29_v7 = vld [vmem:[#allocation2] sm:$0xff]  ;;  %v30_v11 = vld [vmem:[#allocation2 + $0x8] sm:$0xff] }
   0x9   :  { %v31_v6 = vld [vmem:[#allocation2 + $0x10] sm:$0xff]  ;;  %v32_v9 = vld [vmem:[#allocation2 + $0x18] sm:$0xff] }
   0xa   :  { %254 = vmatmul.mubr.msk.bf16.vlgmr.msra.gmra.mrb[0].mxu1 %vm22_vm0, %v269_v3  ;;  %250 = vmatmul.mubr.msk.bf16.vlgmr.msra.gmra.mrb[0].mxu0 %vm22_vm0, %v270_v4  ;;  %v33_v24 = vld [vmem:[#allocation2 + $0x20] sm:$0x3] }
   0xb   :  { %257 = vmatprep.mubr.msk.bf16.mxu1 %vm273_vm1, %v272_v0 }
  0x12   :  { %258 = vmatmul.mubr.msk.bf16.gmra.mrb[4].mxu1 %vm22_vm0, %v271_v5 }
  0xdd   :  { %v120_v8 = vpop.f32.mrb[0].mxu1  ;;  %v112_v10 = vpop.f32.mrb[0].mxu0 }
  0xde   :  { %v136_v12 = vadd.f32 %v120_v8, %v31_v6  ;;  %v255_v13 = vpop.f32.mrb[1].mxu1  ;;  %v134_v14 = vadd.f32 %v112_v10, %v29_v7  ;;  %v251_v15 = vpop.f32.mrb[1].mxu0 }
  0xdf   :  { %v123_v16 = vpop.f32.mrb[2].mxu1  ;;  %v115_v17 = vpop.f32.mrb[2].mxu0 }
  0xe0   :  { %141 = vst.msk [vmem:[#allocation2 + $0x10] sm:$0xff] %vm22_vm0, %v136_v12  ;;  %v137_v18 = vadd.f32 %v123_v16, %v32_v9  ;;  %139 = vst.msk [vmem:[#allocation2] sm:$0xff] %vm22_vm0, %v134_v14  ;;  %v256_v19 = vpop.f32.mrb[3].mxu1  ;;  %v135_v20 = vadd.f32 %v115_v17, %v30_v11  ;;  %v252_v21 = vpop.f32.mrb[3].mxu0 }
  0xe2   :  { %142 = vst.msk [vmem:[#allocation2 + $0x18] sm:$0xff] %vm22_vm0, %v137_v18  ;;  %140 = vst.msk [vmem:[#allocation2 + $0x8] sm:$0xff] %vm22_vm0, %v135_v20 }
  0xe5   :  { %v128_v26 = vpop.f32.mrb[4].mxu1 }
  0xe6   :  { %v138_v29 = vadd.f32 %v128_v26, %v33_v24  ;;  %v259_v30 = vpop.f32.mrb[5].mxu1 }
  0xe7   :  { %v150_v31 = vld [vmem:[#allocation2 + $0x10] sm:$0xff]  ;;  %v148_v32 = vld [vmem:[#allocation2] sm:$0xff]  ;;  %v131_v33 = vpop.f32.mrb[6].mxu1 }
  0xe8   :  { %v162_v34 = vadd.f32 %v220_v25, %v150_v31  ;;  %v160_v36 = vadd.f32 %v220_v25, %v148_v32  ;;  %144 = vst.msk [vmem:[#allocation2 + $0x20] sm:$0x3] %vm27_vm2, %v138_v29  ;;  %v260_v38 = vpop.f32.mrb[7].mxu1 }
  0xe9   :  { %v151_v39 = vld [vmem:[#allocation2 + $0x18] sm:$0xff]  ;;  %v149_v40 = vld [vmem:[#allocation2 + $0x8] sm:$0xff] }
  0xea   :  { %v177_v41 = vadd.f32 %v237_v27, %v162_v34  ;;  %v163_v42 = vadd.f32 %v220_v25, %v151_v39  ;;  %v175_v43 = vadd.f32 %v233_v28, %v160_v36  ;;  %v161_v44 = vadd.f32 %v220_v25, %v149_v40 }
  0xec   :  { %v228_v46 = vpack.c.bf16 %v177_v41, %v177_v41  ;;  %v178_v47 = vadd.f32 %v238_v35, %v163_v42  ;;  %v226_v48 = vpack.c.bf16 %v175_v43, %v175_v43  ;;  %v176_v49 = vadd.f32 %v234_v37, %v161_v44 }
  0xee   :  { %204 = vst.msk [vmem:[%s358_s4 + $0x8] sm:$0xf] %vm201_vm3, %v228_v46  ;;  %v229_v50 = vpack.c.bf16 %v178_v47, %v178_v47  ;;  %202 = vst.msk [vmem:[%s358_s4] sm:$0xf] %vm201_vm3, %v226_v48  ;;  %v227_v51 = vpack.c.bf16 %v176_v49, %v176_v49 }
  0xef   :  { %v152_v53 = vld [vmem:[#allocation2 + $0x20] sm:$0x3] }
  0xf0   :  { %205 = vst.msk [vmem:[%s358_s4 + $0xc] sm:$0xf] %vm201_vm3, %v229_v50  ;;  %203 = vst.msk [vmem:[%s358_s4 + $0x4] sm:$0xf] %vm201_vm3, %v227_v51  ;;  %v164_v54 = vadd.f32 %v220_v25, %v152_v53 }
  0xf2   :  { %v179_v55 = vadd.f32 %v174_v52, %v164_v54 }
  0xf4   :  { %v230_v56 = vpack.c.bf16 %v179_v55, %v179_v55 }
  0xf6   :  { %207 = vst.msk [vmem:[%s358_s4 + $0x10] sm:$0x1] %vm206_vm4, %v230_v56 }

// kernel: dino_feature_forward.16
= control target key start
LH: loop header
LB: loop body
LE: loop exit
PB: predicated region body
PF: predicated region fallthrough
CT: control target
= control target key end

     0   :  { %vm31_vm0 = vcmask 261120   ;;  %vm44_vm1 = vcmask 254976   ;;  %v376_v39 = vmov 0.0   ;;  %vm377_vm2 = vmmov 0   ;;  %s472_s0 = inlined_call_operand.vmem [shape: bf16[34,32], index: 0, kind: input, shape index: {}]   ;;  %s473_s3 = inlined_call_operand.vmem [shape: bf16[32,128], index: 3, kind: input, shape index: {}]   ;;  %s474_s1 = inlined_call_operand.vmem [shape: f32[1,32], index: 1, kind: input, shape index: {}]   ;;  %s475_s2 = inlined_call_operand.vmem [shape: f32[1,32], index: 2, kind: input, shape index: {}]   ;;  %s476_s4 = inlined_call_operand.vmem [shape: f32[1,128], index: 4, kind: input, shape index: {}]   ;;  %s477_s5 = inlined_call_operand.vmem [shape: bf16[34,128], index: 5, kind: output, shape index: {}]  }
   0x1   :  { %v325_v0 = vld [vmem:[%s472_s0 + $0x8] sm:$0xff]   ;;  %v308_v1 = vld [vmem:[%s472_s0] sm:$0xff]   ;;  %v25_v5 = vld [vmem:[%s472_s0 + $0x10] sm:$0x1]  ;;  %348 = vmatprep.subr.bf16.mxu1 %v376_v39  ;;  %332 = vmatprep.subr.bf16.mxu0 %v376_v39 }
   0x2   :  { %v313_v2 = vunpack.c.l.bf16 %v325_v0  ;;  %v314_v3 = vunpack.c.h.bf16 %v325_v0  ;;  %v309_v4 = vunpack.c.l.bf16 %v308_v1  ;;  %v310_v6 = vunpack.c.h.bf16 %v308_v1  ;;  %v354_v38 = vld [vmem:[%s473_s3] sm:$0xff]   ;;  %v355_v40 = vld [vmem:[%s473_s3 + $0x8] sm:$0xff]   ;;  %340 = vmatprep.mubr.msk.bf16.mxu1 %vm377_vm2, %v376_v39  ;;  %336 = vmatprep.mubr.msk.bf16.mxu0 %vm377_vm2, %v376_v39 }
   0x3   :  { %v30_v10 = vunpack.c.l.bf16 %v25_v5  ;;  %350 = vmatpush3.bf16.msra.mxu1 %v354_v38  ;;  %333 = vmatpush3.bf16.msra.mxu0 %v354_v38  ;;  %v289_v58 = vld [vmem:[%s474_s1] ss:$0 sm:$0xff] }
   0x4   :  { %v38_v7 = vsel %vm31_vm0, %v313_v2, 0.0  ;;  %v32_v8 = vsel %vm31_vm0, %v309_v4, 0.0  ;;  %v41_v9 = vsel %vm31_vm0, %v314_v3, 0.0  ;;  %v35_v11 = vsel %vm31_vm0, %v310_v6, 0.0  ;;  %349 = vmatprep.subr.bf16.mxu1 %v376_v39  ;;  %334 = vmatprep.subr.bf16.mxu0 %v376_v39  ;;  %v290_v0 = vld [vmem:[%s475_s2] ss:$0 sm:$0xff] }
   0x5   :  { %39 = vadd.xlane.f32.xlu0 %v38_v7  ;;  %33 = vadd.xlane.f32.xlu1 %v32_v8  ;;  %v45_v12 = vsel %vm44_vm1, %v30_v10, 0.0 }
   0x7   :  { %351 = vmatpush3.bf16.msra.mxu1 %v355_v40  ;;  %335 = vmatpush3.bf16.msra.mxu0 %v355_v40 }
   0x9   :  { %42 = vadd.xlane.f32.xlu0 %v41_v9  ;;  %36 = vadd.xlane.f32.xlu1 %v35_v11 }
   0xd   :  { %46 = vadd.xlane.f32.xlu0 %v45_v12 }
  0x92   :  { %v40_v13 = vpop.xlane.xlu0 %39  ;;  %v34_v14 = vpop.xlane.xlu1 %33 }
  0x93   :  { %v51_v15 = vmul.f32 0.03125, %v40_v13  ;;  %v49_v16 = vmul.f32 0.03125, %v34_v14 }
  0x95   :  { %v422_v17 = vsub.f32 %v313_v2, %v51_v15  ;;  %v424_v18 = vsub.f32 %v309_v4, %v49_v16 }
  0x96   :  { %v43_v19 = vpop.xlane.xlu0 %42  ;;  %v37_v20 = vpop.xlane.xlu1 %36 }
  0x97   :  { %v52_v21 = vmul.f32 0.03125, %v43_v19  ;;  %v61_v22 = vmul.f32 %v422_v17, %v422_v17  ;;  %v50_v23 = vmul.f32 0.03125, %v37_v20  ;;  %v59_v24 = vmul.f32 %v424_v18, %v424_v18 }
  0x99   :  { %v57_v25 = vsub.f32 %v314_v3, %v52_v21  ;;  %v70_v26 = vsel %vm31_vm0, %v61_v22, 0.0  ;;  %v431_v27 = vsub.f32 %v310_v6, %v50_v23  ;;  %v64_v31 = vsel %vm31_vm0, %v59_v24, 0.0 }
  0x9a   :  { %v47_v28 = vpop.xlane.xlu0 %46  ;;  %71 = vadd.xlane.f32.xlu1 %v70_v26 }
  0x9b   :  { %v53_v29 = vmul.f32 0.03125, %v47_v28  ;;  %v62_v30 = vmul.f32 %v57_v25, %v57_v25  ;;  %v60_v32 = vmul.f32 %v431_v27, %v431_v27 }
  0x9d   :  { %v58_v33 = vsub.f32 %v30_v10, %v53_v29  ;;  %v73_v34 = vsel %vm31_vm0, %v62_v30, 0.0  ;;  %v67_v36 = vsel %vm31_vm0, %v60_v32, 0.0 }
  0x9e   :  { %74 = vadd.xlane.f32.xlu0 %v73_v34  ;;  %65 = vadd.xlane.f32.xlu1 %v64_v31 }
  0x9f   :  { %v63_v35 = vmul.f32 %v58_v33, %v58_v33 }
  0xa1   :  { %v76_v37 = vsel %vm44_vm1, %v63_v35, 0.0 }
  0xa2   :  { %77 = vadd.xlane.f32.xlu1 %v76_v37  ;;  %68 = vadd.xlane.f32.xlu0 %v67_v36 }
 0x127   :  { %v72_v41 = vpop.xlane.xlu1 %71 }
 0x128   :  { %v81_v42 = vmul.f32 0.03125, %v72_v41 }
 0x12a   :  { %v86_v43 = vadd.f32 1e-06, %v81_v42 }
 0x12b   :  { %v75_v44 = vpop.xlane.xlu0 %74  ;;  %v66_v45 = vpop.xlane.xlu1 %65 }
 0x12c   :  { %356 = vrsqrt.f32 %v86_v43  ;;  %v82_v46 = vmul.f32 0.03125, %v75_v44  ;;  %v79_v47 = vmul.f32 0.03125, %v66_v45 }
 0x12e   :  { %v87_v48 = vadd.f32 1e-06, %v82_v46  ;;  %v84_v49 = vadd.f32 1e-06, %v79_v47 }
 0x12f   :  { %v69_v50 = vpop.xlane.xlu0 %68  ;;  %v78_v51 = vpop.xlane.xlu1 %77 }
 0x130   :  { %358 = vrsqrt.f32 %v87_v48  ;;  %v80_v52 = vmul.f32 0.03125, %v69_v50  ;;  %v83_v53 = vmul.f32 0.03125, %v78_v51 }
 0x131   :  { %360 = vrsqrt.f32 %v84_v49 }
 0x132   :  { %v85_v54 = vadd.f32 1e-06, %v80_v52  ;;  %v88_v55 = vadd.f32 1e-06, %v83_v53 }
 0x134   :  { %362 = vrsqrt.f32 %v85_v54 }
 0x135   :  { %364 = vrsqrt.f32 %v88_v55 }
 0x136   :  { %v357_v56 = vpop.eup %356 }
 0x137   :  { %v96_v57 = vmul.f32 %v357_v56, %v422_v17  ;;  %v291_v17 = vld [vmem:[%s476_s4] ss:$0 sm:$0xff] }
 0x139   :  { %v108_v62 = vmul.f32 %v289_v58, %v96_v57 }
 0x13a   :  { %v359_v59 = vpop.eup %358 }
 0x13b   :  { %v361_v60 = vpop.eup %360  ;;  %v97_v61 = vmul.f32 %v359_v59, %v57_v25  ;;  %v120_v5 = vadd.f32 %v290_v0, %v108_v62 }
 0x13c   :  { %v94_v63 = vmul.f32 %v361_v60, %v424_v18 }
 0x13d   :  { %v109_v1 = vmul.f32 %v289_v58, %v97_v61 }
 0x13e   :  { %v363_v2 = vpop.eup %362  ;;  %v106_v7 = vmul.f32 %v289_v58, %v94_v63 }
 0x13f   :  { %v365_v3 = vpop.eup %364  ;;  %v95_v4 = vmul.f32 %v363_v2, %v431_v27  ;;  %v121_v6 = vadd.f32 %v290_v0, %v109_v1 }
 0x140   :  { %v98_v8 = vmul.f32 %v365_v3, %v58_v33  ;;  %v118_v12 = vadd.f32 %v290_v0, %v106_v7 }
 0x141   :  { %v124_v9 = vpack.c.bf16 %v121_v6, %v120_v5  ;;  %v107_v10 = vmul.f32 %v289_v58, %v95_v4 }
 0x142   :  { %v110_v11 = vmul.f32 %v289_v58, %v98_v8 }
 0x143   :  { %341 = vmatmul.mubr.msk.bf16.vlgmr.msra.gmra.mrb[0].mxu1 %vm31_vm0, %v124_v9  ;;  %v119_v13 = vadd.f32 %v290_v0, %v107_v10 }
 0x144   :  { %344 = vmatprep.mubr.msk.bf16.mxu1 %vm377_vm2, %v376_v39  ;;  %v122_v15 = vadd.f32 %v290_v0, %v110_v11 }
 0x145   :  { %v123_v14 = vpack.c.bf16 %v119_v13, %v118_v12 }
 0x146   :  { %v125_v16 = vpack.c.bf16 %v122_v15, %v122_v15 }
 0x147   :  { %337 = vmatmul.mubr.msk.bf16.vlgmr.msra.gmra.mrb[0].mxu0 %vm31_vm0, %v123_v14 }
 0x14b   :  { %345 = vmatmul.mubr.msk.bf16.gmra.mrb[4].mxu1 %vm31_vm0, %v125_v16 }
 0x216   :  { %v200_v18 = vpop.f32.mrb[0].mxu1 }
 0x217   :  { %v201_v19 = vadd.f32 %v291_v17, %v200_v18  ;;  %v342_v20 = vpop.f32.mrb[1].mxu1 }
 0x218   :  { %v203_v21 = vpop.f32.mrb[2].mxu1 }
 0x219   :  { %v221_v22 = vmul.f32 0.044715, %v201_v19  ;;  %v204_v23 = vadd.f32 %v291_v17, %v203_v21  ;;  %v343_v24 = vpop.f32.mrb[3].mxu1  ;;  %v216_v63 = vmul.f32 0.5, %v201_v19 }
 0x21a   :  { %v192_v25 = vpop.f32.mrb[0].mxu0 }
 0x21b   :  { %v226_v26 = vmul.f32 %v221_v22, %v201_v19  ;;  %v222_v27 = vmul.f32 0.044715, %v204_v23  ;;  %v193_v28 = vadd.f32 %v291_v17, %v192_v25  ;;  %v338_v29 = vpop.f32.mrb[1].mxu0  ;;  %v217_v0 = vmul.f32 0.5, %v204_v23 }
 0x21c   :  { %v195_v30 = vpop.f32.mrb[2].mxu0 }
 0x21d   :  { %v231_v31 = vmul.f32 %v226_v26, %v201_v19  ;;  %v227_v32 = vmul.f32 %v222_v27, %v204_v23  ;;  %v219_v33 = vmul.f32 0.044715, %v193_v28  ;;  %v339_v34 = vpop.f32.mrb[3].mxu0  ;;  %v196_v35 = vadd.f32 %v291_v17, %v195_v30 }
 0x21e   :  { %v208_v36 = vpop.f32.mrb[4].mxu1  ;;  %v214_v8 = vmul.f32 0.5, %v193_v28 }
 0x21f   :  { %v236_v37 = vadd.f32 %v231_v31, %v201_v19  ;;  %v232_v38 = vmul.f32 %v227_v32, %v204_v23  ;;  %v224_v39 = vmul.f32 %v219_v33, %v193_v28  ;;  %v209_v40 = vadd.f32 %v291_v17, %v208_v36  ;;  %v346_v41 = vpop.f32.mrb[5].mxu1 }
 0x220   :  { %v220_v42 = vmul.f32 0.044715, %v196_v35  ;;  %v211_v43 = vpop.f32.mrb[6].mxu1  ;;  %v215_v9 = vmul.f32 0.5, %v196_v35 }
 0x221   :  { %v241_v44 = vmul.f32 0.7978846, %v236_v37  ;;  %v237_v45 = vadd.f32 %v232_v38, %v204_v23  ;;  %v229_v46 = vmul.f32 %v224_v39, %v193_v28  ;;  %v347_v47 = vpop.f32.mrb[7].mxu1  ;;  %v223_v49 = vmul.f32 0.044715, %v209_v40 }
 0x222   :  { %v225_v48 = vmul.f32 %v220_v42, %v196_v35  ;;  %v218_v14 = vmul.f32 0.5, %v209_v40 }
 0x223   :  { %366 = vtanh.f32 %v241_v44  ;;  %v242_v50 = vmul.f32 0.7978846, %v237_v45  ;;  %v234_v51 = vadd.f32 %v229_v46, %v193_v28  ;;  %v228_v53 = vmul.f32 %v223_v49, %v209_v40 }
 0x224   :  { %v230_v52 = vmul.f32 %v225_v48, %v196_v35 }
 0x225   :  { %368 = vtanh.f32 %v242_v50  ;;  %v239_v54 = vmul.f32 0.7978846, %v234_v51  ;;  %v233_v56 = vmul.f32 %v228_v53, %v209_v40 }
 0x226   :  { %v235_v55 = vadd.f32 %v230_v52, %v196_v35 }
 0x227   :  { %370 = vtanh.f32 %v239_v54  ;;  %v238_v58 = vadd.f32 %v233_v56, %v209_v40 }
 0x228   :  { %v240_v57 = vmul.f32 0.7978846, %v235_v55 }
 0x229   :  { %v243_v59 = vmul.f32 0.7978846, %v238_v58 }
 0x22a   :  { %372 = vtanh.f32 %v240_v57 }
 0x22b   :  { %374 = vtanh.f32 %v243_v59 }
 0x22d   :  { %v367_v60 = vpop.eup %366 }
 0x22e   :  { %v251_v61 = vadd.f32 1.0, %v367_v60 }
 0x22f   :  { %v369_v62 = vpop.eup %368 }
 0x230   :  { %v252_v1 = vadd.f32 1.0, %v369_v62  ;;  %v256_v3 = vmul.f32 %v251_v61, %v216_v63 }
 0x231   :  { %v371_v2 = vpop.eup %370 }
 0x232   :  { %v257_v4 = vmul.f32 %v252_v1, %v217_v0  ;;  %v249_v5 = vadd.f32 1.0, %v371_v2 }
 0x234   :  { %v373_v6 = vpop.eup %372  ;;  %v323_v7 = vpack.c.bf16 %v257_v4, %v256_v3  ;;  %v254_v12 = vmul.f32 %v249_v5, %v214_v8 }
 0x235   :  { %v250_v10 = vadd.f32 1.0, %v373_v6  ;;  %v375_v11 = vpop.eup %374 }
 0x236   :  { %326 = vst [vmem:[%s477_s5 + $0x8] sm:$0xff] %v323_v7   ;;  %v253_v15 = vadd.f32 1.0, %v375_v11 }
 0x237   :  { %v255_v13 = vmul.f32 %v250_v10, %v215_v9 }
 0x238   :  { %v258_v17 = vmul.f32 %v253_v15, %v218_v14 }
 0x239   :  { %v318_v16 = vpack.c.bf16 %v255_v13, %v254_v12 }
 0x23a   :  { %v306_v18 = vpack.c.bf16 %v258_v17, %v258_v17 }
 0x23b   :  { %319 = vst [vmem:[%s477_s5] sm:$0xff] %v318_v16  }
 0x23c   :  { %284 = vst [vmem:[%s477_s5 + $0x10] sm:$0x1] %v306_v18 }

// kernel: dino_feature_forward.23
= control target key start
LH: loop header
LB: loop body
LE: loop exit
PB: predicated region body
PF: predicated region fallthrough
CT: control target
= control target key end

     0   :  { %vm24_vm0 = vcmask 261120   ;;  %vm37_vm1 = vcmask 254976   ;;  %s211_s0 = inlined_call_operand.vmem [shape: bf16[34,32], index: 0, kind: input, shape index: {}]   ;;  %s212_s1 = inlined_call_operand.vmem [shape: f32[1,32], index: 1, kind: input, shape index: {}]   ;;  %s213_s2 = inlined_call_operand.vmem [shape: f32[1,32], index: 2, kind: input, shape index: {}]   ;;  %s214_s3 = inlined_call_operand.vmem [shape: f32[34,32], index: 3, kind: output, shape index: {}]  }
   0x1   :  { %v128_v0 = vld [vmem:[%s211_s0] sm:$0xff]   ;;  %v135_v1 = vld [vmem:[%s211_s0 + $0x8] sm:$0xff]   ;;  %v18_v6 = vld [vmem:[%s211_s0 + $0x10] sm:$0x1] }
   0x2   :  { %v129_v2 = vunpack.c.l.bf16 %v128_v0  ;;  %v133_v3 = vunpack.c.l.bf16 %v135_v1  ;;  %v130_v4 = vunpack.c.h.bf16 %v128_v0  ;;  %v134_v5 = vunpack.c.h.bf16 %v135_v1  ;;  %v125_v54 = vld [vmem:[%s212_s1] ss:$0 sm:$0xff] }
   0x3   :  { %v23_v11 = vunpack.c.l.bf16 %v18_v6  ;;  %v126_v56 = vld [vmem:[%s213_s2] ss:$0 sm:$0xff] }
   0x4   :  { %v25_v7 = vsel %vm24_vm0, %v129_v2, 0.0  ;;  %v31_v8 = vsel %vm24_vm0, %v133_v3, 0.0  ;;  %v28_v9 = vsel %vm24_vm0, %v130_v4, 0.0  ;;  %v34_v10 = vsel %vm24_vm0, %v134_v5, 0.0 }
   0x5   :  { %26 = vadd.xlane.f32.xlu0 %v25_v7  ;;  %32 = vadd.xlane.f32.xlu1 %v31_v8  ;;  %v38_v12 = vsel %vm37_vm1, %v23_v11, 0.0 }
   0x9   :  { %29 = vadd.xlane.f32.xlu0 %v28_v9  ;;  %35 = vadd.xlane.f32.xlu1 %v34_v10 }
   0xd   :  { %39 = vadd.xlane.f32.xlu0 %v38_v12 }
  0x92   :  { %v27_v13 = vpop.xlane.xlu0 %26  ;;  %v33_v14 = vpop.xlane.xlu1 %32 }
  0x93   :  { %v42_v15 = vmul.f32 0.03125, %v27_v13  ;;  %v44_v16 = vmul.f32 0.03125, %v33_v14 }
  0x95   :  { %v47_v17 = vsub.f32 %v129_v2, %v42_v15  ;;  %v49_v18 = vsub.f32 %v133_v3, %v44_v16 }
  0x96   :  { %v30_v19 = vpop.xlane.xlu0 %29  ;;  %v36_v20 = vpop.xlane.xlu1 %35 }
  0x97   :  { %v43_v21 = vmul.f32 0.03125, %v30_v19  ;;  %v45_v22 = vmul.f32 0.03125, %v36_v20  ;;  %v52_v23 = vmul.f32 %v47_v17, %v47_v17  ;;  %v54_v24 = vmul.f32 %v49_v18, %v49_v18 }
  0x99   :  { %v48_v25 = vsub.f32 %v130_v4, %v43_v21  ;;  %v50_v26 = vsub.f32 %v134_v5, %v45_v22  ;;  %v57_v27 = vsel %vm24_vm0, %v52_v23, 0.0  ;;  %v63_v30 = vsel %vm24_vm0, %v54_v24, 0.0 }
  0x9a   :  { %58 = vadd.xlane.f32.xlu1 %v57_v27  ;;  %v40_v28 = vpop.xlane.xlu0 %39 }
  0x9b   :  { %v46_v29 = vmul.f32 0.03125, %v40_v28  ;;  %v53_v31 = vmul.f32 %v48_v25, %v48_v25  ;;  %v55_v32 = vmul.f32 %v50_v26, %v50_v26 }
  0x9d   :  { %v51_v33 = vsub.f32 %v23_v11, %v46_v29  ;;  %v60_v34 = vsel %vm24_vm0, %v53_v31, 0.0  ;;  %v66_v35 = vsel %vm24_vm0, %v55_v32, 0.0 }
  0x9e   :  { %64 = vadd.xlane.f32.xlu1 %v63_v30  ;;  %61 = vadd.xlane.f32.xlu0 %v60_v34 }
  0x9f   :  { %v56_v36 = vmul.f32 %v51_v33, %v51_v33 }
  0xa1   :  { %v69_v37 = vsel %vm37_vm1, %v56_v36, 0.0 }
  0xa2   :  { %67 = vadd.xlane.f32.xlu0 %v66_v35  ;;  %70 = vadd.xlane.f32.xlu1 %v69_v37 }
 0x127   :  { %v59_v38 = vpop.xlane.xlu1 %58 }
 0x128   :  { %v72_v39 = vmul.f32 0.03125, %v59_v38 }
 0x12a   :  { %v77_v40 = vadd.f32 1e-06, %v72_v39 }
 0x12b   :  { %v65_v41 = vpop.xlane.xlu1 %64  ;;  %v62_v42 = vpop.xlane.xlu0 %61 }
 0x12c   :  { %136 = vrsqrt.f32 %v77_v40  ;;  %v74_v43 = vmul.f32 0.03125, %v65_v41  ;;  %v73_v44 = vmul.f32 0.03125, %v62_v42 }
 0x12e   :  { %v79_v45 = vadd.f32 1e-06, %v74_v43  ;;  %v78_v46 = vadd.f32 1e-06, %v73_v44 }
 0x12f   :  { %v71_v47 = vpop.xlane.xlu1 %70  ;;  %v68_v48 = vpop.xlane.xlu0 %67 }
 0x130   :  { %138 = vrsqrt.f32 %v79_v45  ;;  %v76_v49 = vmul.f32 0.03125, %v71_v47  ;;  %v75_v50 = vmul.f32 0.03125, %v68_v48 }
 0x131   :  { %140 = vrsqrt.f32 %v78_v46 }
 0x132   :  { %v81_v51 = vadd.f32 1e-06, %v76_v49  ;;  %v80_v52 = vadd.f32 1e-06, %v75_v50 }
 0x134   :  { %142 = vrsqrt.f32 %v81_v51 }
 0x135   :  { %144 = vrsqrt.f32 %v80_v52 }
 0x136   :  { %v137_v53 = vpop.eup %136 }
 0x137   :  { %v87_v55 = vmul.f32 %v137_v53, %v47_v17 }
 0x139   :  { %v99_v57 = vmul.f32 %v125_v54, %v87_v55 }
 0x13a   :  { %v139_v58 = vpop.eup %138 }
 0x13b   :  { %v141_v59 = vpop.eup %140  ;;  %v111_v60 = vadd.f32 %v126_v56, %v99_v57  ;;  %v89_v61 = vmul.f32 %v139_v58, %v49_v18 }
 0x13c   :  { %v88_v62 = vmul.f32 %v141_v59, %v48_v25 }
 0x13d   :  { %116 = vst.msk [vmem:[%s214_s3] sm:$0xff] %vm24_vm0, %v111_v60  ;;  %v101_v63 = vmul.f32 %v125_v54, %v89_v61 }
 0x13e   :  { %v143_v0 = vpop.eup %142  ;;  %v100_v1 = vmul.f32 %v125_v54, %v88_v62 }
 0x13f   :  { %v145_v2 = vpop.eup %144  ;;  %v113_v3 = vadd.f32 %v126_v56, %v101_v63  ;;  %v91_v4 = vmul.f32 %v143_v0, %v51_v33 }
 0x140   :  { %v112_v5 = vadd.f32 %v126_v56, %v100_v1  ;;  %v90_v6 = vmul.f32 %v145_v2, %v50_v26 }
 0x141   :  { %118 = vst.msk [vmem:[%s214_s3 + $0x10] sm:$0xff] %vm24_vm0, %v113_v3  ;;  %v103_v7 = vmul.f32 %v125_v54, %v91_v4 }
 0x142   :  { %117 = vst.msk [vmem:[%s214_s3 + $0x8] sm:$0xff] %vm24_vm0, %v112_v5  ;;  %v102_v8 = vmul.f32 %v125_v54, %v90_v6 }
 0x143   :  { %v115_v9 = vadd.f32 %v126_v56, %v103_v7 }
 0x144   :  { %v114_v10 = vadd.f32 %v126_v56, %v102_v8 }
 0x145   :  { %120 = vst.msk [vmem:[%s214_s3 + $0x20] sm:$0x3] %vm37_vm1, %v115_v9 }
 0x146   :  { %119 = vst.msk [vmem:[%s214_s3 + $0x18] sm:$0xff] %vm24_vm0, %v114_v10 }

// kernel: dino_feature_forward.17
= control target key start
LH: loop header
LB: loop body
LE: loop exit
PB: predicated region body
PF: predicated region fallthrough
CT: control target
= control target key end

     0   :  { %vm22_vm0 = vcmask 261120   ;;  %v353_v0 = vmov 0.0   ;;  %vm354_vm1 = vmmov 0   ;;  %vm27_vm2 = vcmask 254976   ;;  %s453_s1 = inlined_call_operand.vmem [shape: bf16[128,32], index: 1, kind: input, shape index: {}]   ;;  %s454_s0 = inlined_call_operand.vmem [shape: bf16[34,128], index: 0, kind: input, shape index: {}]   ;;  %s455_s3 = inlined_call_operand.vmem [shape: bf16[34,32], index: 3, kind: input, shape index: {}]   ;;  %s456_s2 = inlined_call_operand.vmem [shape: f32[1,32], index: 2, kind: input, shape index: {}]   ;;  %s457_s4 = inlined_call_operand.vmem [shape: bf16[34,32], index: 4, kind: output, shape index: {}]  }
   0x1   :  { %324 = vmatprep.subr.bf16.mxu1 %v353_v0  ;;  %v342_v1 = vld [vmem:[%s453_s1] sm:$0xff]   ;;  %296 = vmatprep.subr.bf16.mxu0 %v353_v0  ;;  %25 = vst.msk [vmem:[#allocation2 + $0x10] sm:$0xff] %vm22_vm0, %v353_v0  ;;  %23 = vst.msk [vmem:[#allocation2] sm:$0xff] %vm22_vm0, %v353_v0  ;;  %v343_v2 = vld [vmem:[%s453_s1 + $0x8] sm:$0xff]   ;;  %vm243_vm3 = vcmask 257024   ;;  %vm248_vm4 = vcmask 253952  }
   0x2   :  { %24 = vst.msk [vmem:[#allocation2 + $0x8] sm:$0xff] %vm22_vm0, %v353_v0  ;;  %26 = vst.msk [vmem:[#allocation2 + $0x18] sm:$0xff] %vm22_vm0, %v353_v0  ;;  %316 = vmatprep.mubr.msk.bf16.mxu1 %vm354_vm1, %v353_v0  ;;  %312 = vmatprep.mubr.msk.bf16.mxu0 %vm354_vm1, %v353_v0  ;;  %v344_v3 = vld [vmem:[%s453_s1 + $0x10] sm:$0xff]   ;;  %v345_v4 = vld [vmem:[%s453_s1 + $0x18] sm:$0xff]  }
   0x3   :  { %332 = vmatpush3.bf16.msra.mxu1 %v342_v1  ;;  %297 = vmatpush3.bf16.msra.mxu0 %v342_v1  ;;  %v346_v5 = vld [vmem:[%s453_s1 + $0x20] sm:$0xff]   ;;  %v347_v6 = vld [vmem:[%s453_s1 + $0x28] sm:$0xff]   ;;  %v348_v7 = vld [vmem:[%s453_s1 + $0x30] sm:$0xff]   ;;  %28 = vst.msk [vmem:[#allocation2 + $0x20] sm:$0x3] %vm27_vm2, %v353_v0 }
   0x4   :  { %325 = vmatprep.subr.bf16.mxu1 %v353_v0  ;;  %298 = vmatprep.subr.bf16.mxu0 %v353_v0  ;;  %v349_v8 = vld [vmem:[%s453_s1 + $0x38] sm:$0xff]   ;;  %v350_v9 = vld [vmem:[%s454_s0 + $0x8] sm:$0xff]   ;;  %v351_v10 = vld [vmem:[%s454_s0] sm:$0xff]  }
   0x5   :  { %v352_v11 = vld [vmem:[%s454_s0 + $0x10] ss:$0 sps:$4 sm:$0x11]   ;;  %v284_v28 = vld [vmem:[%s455_s3 + $0x8] sm:$0xff]   ;;  %v277_v29 = vld [vmem:[%s455_s3] sm:$0xff]  }
   0x6   :  { %v265_v31 = vld [vmem:[%s456_s2] ss:$0 sm:$0xff]  ;;  %v282_v33 = vunpack.c.l.bf16 %v284_v28  ;;  %v278_v34 = vunpack.c.l.bf16 %v277_v29  ;;  %v283_v41 = vunpack.c.h.bf16 %v284_v28  ;;  %v279_v43 = vunpack.c.h.bf16 %v277_v29  ;;  %v211_v51 = vld [vmem:[%s455_s3 + $0x10] sm:$0x1] }
   0x7   :  { %333 = vmatpush3.bf16.msra.mxu1 %v343_v2  ;;  %299 = vmatpush3.bf16.msra.mxu0 %v343_v2  ;;  %v216_v58 = vunpack.c.l.bf16 %v211_v51 }
   0x8   :  { %326 = vmatprep.subr.bf16.mxu1 %v353_v0  ;;  %300 = vmatprep.subr.bf16.mxu0 %v353_v0  ;;  %v31_v12 = vld [vmem:[#allocation2 + $0x10] sm:$0xff]  ;;  %v29_v13 = vld [vmem:[#allocation2] sm:$0xff] }
   0x9   :  { %v32_v15 = vld [vmem:[#allocation2 + $0x18] sm:$0xff]  ;;  %v30_v17 = vld [vmem:[#allocation2 + $0x8] sm:$0xff] }
   0xa   :  { %v33_v30 = vld [vmem:[#allocation2 + $0x20] sm:$0x3] }
   0xb   :  { %334 = vmatpush3.bf16.msra.mxu1 %v344_v3  ;;  %301 = vmatpush3.bf16.msra.mxu0 %v344_v3 }
   0xc   :  { %327 = vmatprep.subr.bf16.mxu1 %v353_v0  ;;  %302 = vmatprep.subr.bf16.mxu0 %v353_v0 }
   0xf   :  { %335 = vmatpush3.bf16.msra.mxu1 %v345_v4  ;;  %303 = vmatpush3.bf16.msra.mxu0 %v345_v4 }
  0x10   :  { %328 = vmatprep.subr.bf16.mxu1 %v353_v0  ;;  %304 = vmatprep.subr.bf16.mxu0 %v353_v0 }
  0x13   :  { %336 = vmatpush3.bf16.msra.mxu1 %v346_v5  ;;  %305 = vmatpush3.bf16.msra.mxu0 %v346_v5 }
  0x14   :  { %329 = vmatprep.subr.bf16.mxu1 %v353_v0  ;;  %306 = vmatprep.subr.bf16.mxu0 %v353_v0 }
  0x17   :  { %337 = vmatpush3.bf16.msra.mxu1 %v347_v6  ;;  %307 = vmatpush3.bf16.msra.mxu0 %v347_v6 }
  0x18   :  { %330 = vmatprep.subr.bf16.mxu1 %v353_v0  ;;  %308 = vmatprep.subr.bf16.mxu0 %v353_v0 }
  0x1b   :  { %338 = vmatpush3.bf16.msra.mxu1 %v348_v7  ;;  %309 = vmatpush3.bf16.msra.mxu0 %v348_v7 }
  0x1c   :  { %331 = vmatprep.subr.bf16.mxu1 %v353_v0  ;;  %310 = vmatprep.subr.bf16.mxu0 %v353_v0 }
  0x1f   :  { %339 = vmatpush3.bf16.msra.mxu1 %v349_v8  ;;  %311 = vmatpush3.bf16.msra.mxu0 %v349_v8 }
  0x22   :  { %317 = vmatmul.mubr.bf16.vlgmr.msra.gmra.mrb[0].mxu1 %v350_v9  ;;  %313 = vmatmul.mubr.bf16.vlgmr.msra.gmra.mrb[0].mxu0 %v351_v10 }
  0x23   :  { %320 = vmatprep.mubr.msk.bf16.mxu1 %vm354_vm1, %v353_v0 }
  0x2a   :  { %321 = vmatmul.mubr.bf16.gmra.mrb[4].mxu1 %v352_v11 }
  0xf5   :  { %v161_v14 = vpop.f32.mrb[0].mxu1  ;;  %v153_v16 = vpop.f32.mrb[0].mxu0 }
  0xf6   :  { %v177_v18 = vadd.f32 %v161_v14, %v31_v12  ;;  %v318_v19 = vpop.f32.mrb[1].mxu1  ;;  %v175_v20 = vadd.f32 %v153_v16, %v29_v13  ;;  %v314_v21 = vpop.f32.mrb[1].mxu0 }
  0xf7   :  { %v164_v22 = vpop.f32.mrb[2].mxu1  ;;  %v156_v23 = vpop.f32.mrb[2].mxu0 }
  0xf8   :  { %183 = vst.msk [vmem:[#allocation2 + $0x10] sm:$0xff] %vm22_vm0, %v177_v18  ;;  %v178_v24 = vadd.f32 %v164_v22, %v32_v15  ;;  %181 = vst.msk [vmem:[#allocation2] sm:$0xff] %vm22_vm0, %v175_v20  ;;  %v319_v25 = vpop.f32.mrb[3].mxu1  ;;  %v176_v26 = vadd.f32 %v156_v23, %v30_v17  ;;  %v315_v27 = vpop.f32.mrb[3].mxu0 }
  0xfa   :  { %184 = vst.msk [vmem:[#allocation2 + $0x18] sm:$0xff] %vm22_vm0, %v178_v24  ;;  %182 = vst.msk [vmem:[#allocation2 + $0x8] sm:$0xff] %vm22_vm0, %v176_v26 }
  0xfd   :  { %v169_v32 = vpop.f32.mrb[4].mxu1 }
  0xfe   :  { %v179_v35 = vadd.f32 %v169_v32, %v33_v30  ;;  %v322_v36 = vpop.f32.mrb[5].mxu1 }
  0xff   :  { %v192_v37 = vld [vmem:[#allocation2 + $0x10] sm:$0xff]  ;;  %v190_v38 = vld [vmem:[#allocation2] sm:$0xff]  ;;  %v172_v39 = vpop.f32.mrb[6].mxu1 }
 0x100   :  { %v204_v40 = vadd.f32 %v265_v31, %v192_v37  ;;  %v202_v42 = vadd.f32 %v265_v31, %v190_v38  ;;  %186 = vst.msk [vmem:[#allocation2 + $0x20] sm:$0x3] %vm27_vm2, %v179_v35  ;;  %v323_v44 = vpop.f32.mrb[7].mxu1 }
 0x101   :  { %v193_v45 = vld [vmem:[#allocation2 + $0x18] sm:$0xff]  ;;  %v191_v46 = vld [vmem:[#allocation2 + $0x8] sm:$0xff] }
 0x102   :  { %v219_v47 = vadd.f32 %v282_v33, %v204_v40  ;;  %v205_v48 = vadd.f32 %v265_v31, %v193_v45  ;;  %v217_v49 = vadd.f32 %v278_v34, %v202_v42  ;;  %v203_v50 = vadd.f32 %v265_v31, %v191_v46 }
 0x104   :  { %v273_v52 = vpack.c.bf16 %v219_v47, %v219_v47  ;;  %v220_v53 = vadd.f32 %v283_v41, %v205_v48  ;;  %v271_v54 = vpack.c.bf16 %v217_v49, %v217_v49  ;;  %v218_v55 = vadd.f32 %v279_v43, %v203_v50 }
 0x106   :  { %246 = vst.msk [vmem:[%s457_s4 + $0x8] sm:$0xf] %vm243_vm3, %v273_v52  ;;  %v274_v56 = vpack.c.bf16 %v220_v53, %v220_v53  ;;  %244 = vst.msk [vmem:[%s457_s4] sm:$0xf] %vm243_vm3, %v271_v54  ;;  %v272_v57 = vpack.c.bf16 %v218_v55, %v218_v55 }
 0x107   :  { %v194_v59 = vld [vmem:[#allocation2 + $0x20] sm:$0x3] }
 0x108   :  { %247 = vst.msk [vmem:[%s457_s4 + $0xc] sm:$0xf] %vm243_vm3, %v274_v56  ;;  %245 = vst.msk [vmem:[%s457_s4 + $0x4] sm:$0xf] %vm243_vm3, %v272_v57  ;;  %v206_v60 = vadd.f32 %v265_v31, %v194_v59 }
 0x10a   :  { %v221_v61 = vadd.f32 %v216_v58, %v206_v60 }
 0x10c   :  { %v275_v62 = vpack.c.bf16 %v221_v61, %v221_v61 }
 0x10e   :  { %249 = vst.msk [vmem:[%s457_s4 + $0x10] sm:$0x1] %vm248_vm4, %v275_v62 }

</bundles_post_ra>
